<compile_context>
chip_gen: v7x
topology: tpu7x:2x2x1
jax: 0.10.0
libtpu: 0.0.40
codegen_flags: <defaults>
</compile_context>

<pallas_src>
import math
from functools import partial

import jax
import jax.numpy as jnp
from jax import lax
from jax.experimental import pallas as pl
from jax.experimental.pallas import tpu as pltpu

NEG_INF = -1e30
LN_EPS = 1e-5


def _layernorm(v, g, b):
    mu = jnp.mean(v, axis=-1, keepdims=True)
    var = jnp.mean(jnp.square(v - mu), axis=-1, keepdims=True)
    return (v - mu) * lax.rsqrt(var + LN_EPS) * g + b


def _block_kernel(heads,
                  x_ref, mask_ref,
                  ln1_g_ref, ln1_b_ref, wqkv_ref, wo_ref,
                  ln2_g_ref, ln2_b_ref, w1_ref, b1_ref, w2_ref, b2_ref,
                  o_ref,
                  q_scr, k_scr, v_scr, ctx_scr, m_scr, l_scr, acc_scr):
    qt = pl.program_id(1)                       # q-tile index == # of prefix KV blocks
    x = x_ref[0]                                # (TQ, D) f32 query-row tile
    TQ, D = x.shape
    hd = D // heads
    scale = 1.0 / math.sqrt(hd)
    row0 = pl.multiple_of(qt * TQ, TQ)          # global row offset of this tile

    # ---------------- attention branch ----------------
    # LayerNorm 1 in f32 (VPU).
    xn = _layernorm(x, ln1_g_ref[0], ln1_b_ref[0])

    # Fused QKV projection: one K=D, N=3D bf16 MXU matmul, f32 accumulation.
    qkv = jnp.dot(xn.astype(jnp.bfloat16), wqkv_ref[...],
                  preferred_element_type=jnp.float32)              # (TQ, 3D) f32

    # Scatter this tile's Q/K/V into head-major slabs; the softmax scale is
    # folded into Q here (review item).  K/V land in the causal-carry scratch at
    # this tile's global row offset.
    for h in range(heads):
        q_scr[h] = (qkv[:, h * hd:(h + 1) * hd] * scale).astype(jnp.bfloat16)
        k_scr[h, pl.ds(row0, TQ), :] = (
            qkv[:, D + h * hd:D + (h + 1) * hd].astype(jnp.bfloat16))
        v_scr[h, pl.ds(row0, TQ), :] = (
            qkv[:, 2 * D + h * hd:2 * D + (h + 1) * hd].astype(jnp.bfloat16))

    q_hm = q_scr[...]                                              # (H, TQ, hd) bf16

    # ---- diagonal KV block (kb == qt): single additive bias (causal + user mask),
    # initializes the online-softmax state (no -inf init / no correction pass).
    r = lax.broadcasted_iota(jnp.int32, (TQ, TQ), 0)
    c = lax.broadcasted_iota(jnp.int32, (TQ, TQ), 1)
    bias_diag = (jnp.where(c <= r, 0.0, NEG_INF)
                 + mask_ref[0, qt].astype(jnp.float32))            # (TQ, TQ) f32

    k_diag = k_scr[:, pl.ds(row0, TQ), :]
    v_diag = v_scr[:, pl.ds(row0, TQ), :]
    s = jnp.einsum("hqd,hkd->hqk", q_hm, k_diag,
                   preferred_element_type=jnp.float32)             # (H, TQ, TQ) f32
    s = s + bias_diag[None]
    m0 = jnp.max(s, axis=-1, keepdims=True)
    p = jnp.exp(s - m0)
    m_scr[...] = m0
    l_scr[...] = jnp.sum(p, axis=-1, keepdims=True)
    acc_scr[...] = jnp.einsum("hqk,hkd->hqd", p.astype(jnp.bfloat16), v_diag,
                              preferred_element_type=jnp.float32)  # (H, TQ, hd) f32

    # ---- fully visible prefix KV blocks kb in [0, qt): flash-style online softmax.
    # The loop bound IS the causal frontier, so blocks past it cost nothing and
    # unwritten carry rows are never read (no zero-fill needed).
    def kv_step(kb, carry):
        col0 = pl.multiple_of(kb * TQ, TQ)
        k_blk = k_scr[:, pl.ds(col0, TQ), :]                       # (H, TQ, hd) bf16
        v_blk = v_scr[:, pl.ds(col0, TQ), :]
        s_b = jnp.einsum("hqd,hkd->hqk", q_hm, k_blk,
                         preferred_element_type=jnp.float32)
        s_b = s_b + mask_ref[0, kb].astype(jnp.float32)[None]      # user mask only
        m_prev = m_scr[...]
        m_new = jnp.maximum(m_prev, jnp.max(s_b, axis=-1, keepdims=True))
        alpha = jnp.exp(m_prev - m_new)
        p_b = jnp.exp(s_b - m_new)                                 # unnormalized
        l_scr[...] = alpha * l_scr[...] + jnp.sum(p_b, axis=-1, keepdims=True)
        acc_scr[...] = alpha * acc_scr[...] + jnp.einsum(
            "hqk,hkd->hqd", p_b.astype(jnp.bfloat16), v_blk,
            preferred_element_type=jnp.float32)
        m_scr[...] = m_new
        return carry

    lax.fori_loop(0, qt, kv_step, 0)

    # Normalize AFTER the PV matmuls: one multiply over (H, TQ, hd), not (H, TQ, S).
    ctx = acc_scr[...] * pl.reciprocal(l_scr[...], approx=True)    # (H, TQ, hd) f32

    # Re-pack contexts lane-major (TQ, D) and do ONE K=D output projection.
    for h in range(heads):
        ctx_scr[:, h * hd:(h + 1) * hd] = ctx[h].astype(jnp.bfloat16)
    attn_proj = jnp.dot(ctx_scr[...], wo_ref[...],
                        preferred_element_type=jnp.float32)        # (TQ, D) f32

    x1 = x + attn_proj                                             # first residual

    # ---------------- feed-forward branch ----------------
    xn2 = _layernorm(x1, ln2_g_ref[0], ln2_b_ref[0])
    h1 = jnp.dot(xn2.astype(jnp.bfloat16), w1_ref[...],
                 preferred_element_type=jnp.float32) + b1_ref[0]
    h1 = jnp.maximum(h1, 0.0)
    ff = jnp.dot(h1.astype(jnp.bfloat16), w2_ref[...],
                 preferred_element_type=jnp.float32) + b2_ref[0]

    o_ref[0] = (x1 + ff).astype(o_ref.dtype)


def block_forward(x, attention_mask, params, heads):
    """x: (B, S, D) f32, attention_mask: (B, S, S) additive f32 mask."""
    B, S, D = x.shape
    assert D % heads == 0
    hd = D // heads
    TQ = min(S, 128)                    # sequence tile (rows of x per grid step)
    assert S % TQ == 0
    NQ = S // TQ

    # Weights live in HBM as bf16 (MXU operands); LN params / biases stay f32.
    wqkv = params["wqkv"].astype(jnp.bfloat16)
    wo = params["wo"].astype(jnp.bfloat16)
    w1 = params["w1"].astype(jnp.bfloat16)
    w2 = params["w2"].astype(jnp.bfloat16)

    # Additive user mask: bf16 (halves HBM traffic) and pre-blocked over the KV
    # axis -> (B, NQ_kv, S, TQ) so the kernel indexes KV blocks on a major dim.
    mask_r = jnp.transpose(
        attention_mask.reshape(B, S, NQ, TQ), (0, 2, 1, 3)).astype(jnp.bfloat16)

    # Replicated params: constant index_map + single VMEM buffer (no double-buffering).
    rep = lambda shape: pl.BlockSpec(shape, lambda b, q: (0, 0),
                                     pipeline_mode=pl.Buffered(1))

    in_specs = [
        pl.BlockSpec((1, TQ, D), lambda b, q: (b, q, 0)),          # x tile
        pl.BlockSpec((1, NQ, TQ, TQ), lambda b, q: (b, 0, q, 0)),  # mask row-band, KV-blocked
        rep((1, D)), rep((1, D)),                                  # ln1 gamma/beta
        rep((D, 3 * D)),                                           # Wqkv (in,out) bf16
        rep((D, D)),                                               # Wo   (in,out) bf16
        rep((1, D)), rep((1, D)),                                  # ln2 gamma/beta
        rep((D, 4 * D)), rep((1, 4 * D)),                          # W1 bf16, b1 f32
        rep((4 * D, D)), rep((1, D)),                              # W2 bf16, b2 f32
    ]

    return pl.pallas_call(
        partial(_block_kernel, heads),
        out_shape=jax.ShapeDtypeStruct((B, S, D), x.dtype),
        grid_spec=pltpu.PrefetchScalarGridSpec(
            num_scalar_prefetch=0,
            grid=(B, NQ),                # batch outer (parallel), q-tiles inner
            in_specs=in_specs,
            out_specs=pl.BlockSpec((1, TQ, D), lambda b, q: (b, q, 0)),
            scratch_shapes=[
                pltpu.VMEM((heads, TQ, hd), jnp.bfloat16),   # Q tile, head-major
                pltpu.VMEM((heads, S, hd), jnp.bfloat16),    # K causal carry
                pltpu.VMEM((heads, S, hd), jnp.bfloat16),    # V causal carry
                pltpu.VMEM((TQ, D), jnp.bfloat16),           # packed context
                pltpu.VMEM((heads, TQ, 1), jnp.float32),     # online-softmax max
                pltpu.VMEM((heads, TQ, 1), jnp.float32),     # online-softmax denom
                pltpu.VMEM((heads, TQ, hd), jnp.float32),    # unnormalized PV acc
            ],
        ),
        compiler_params=pltpu.CompilerParams(
            # q-tile axis carries the causal K/V prefix -> must be "arbitrary".
            dimension_semantics=("parallel", "arbitrary"),
            # Budget re-derived for v7x's 64 MiB physical VMEM (single-buffered
            # weights + carries + TQ-bounded temporaries); v6e/v5e can go higher.
            vmem_limit_bytes=56 * 1024 * 1024,
        ),
    )(x, mask_r,
      params["ln1_g"], params["ln1_b"], wqkv, wo,
      params["ln2_g"], params["ln2_b"], w1, params["b1"], w2, params["b2"])


def block_reference(x, attention_mask, params, heads):
    """Pure-JAX f32 reference mirroring the PyTorch Block forward."""
    B, S, D = x.shape
    hd = D // heads

    def ln(v, g, b):
        mu = jnp.mean(v, axis=-1, keepdims=True)
        var = jnp.mean(jnp.square(v - mu), axis=-1, keepdims=True)
        return (v - mu) * lax.rsqrt(var + LN_EPS) * g + b

    xn = ln(x, params["ln1_g"][0], params["ln1_b"][0])
    qkv = xn @ params["wqkv"]                                  # (B, S, 3D)
    q, k, v = jnp.split(qkv, 3, axis=-1)
    q = q.reshape(B, S, heads, hd).transpose(0, 2, 1, 3)
    k = k.reshape(B, S, heads, hd).transpose(0, 2, 1, 3)
    v = v.reshape(B, S, heads, hd).transpose(0, 2, 1, 3)
    scores = jnp.einsum("bhqd,bhkd->bhqk", q, k) / math.sqrt(hd)
    causal = jnp.where(jnp.tril(jnp.ones((S, S), bool)), 0.0, NEG_INF)
    scores = scores + causal[None, None] + attention_mask[:, None]
    p = jax.nn.softmax(scores, axis=-1)
    attn = jnp.einsum("bhqk,bhkd->bhqd", p, v).transpose(0, 2, 1, 3).reshape(B, S, D)
    x1 = x + attn @ params["wo"]

    xn2 = ln(x1, params["ln2_g"][0], params["ln2_b"][0])
    h1 = jnp.maximum(xn2 @ params["w1"] + params["b1"][0], 0.0)
    return x1 + h1 @ params["w2"] + params["b2"][0]


def init_params(key, dmodel):
    ks = jax.random.split(key, 6)
    s = 0.05
    return {
        "ln1_g": jnp.ones((1, dmodel), jnp.float32),
        "ln1_b": jnp.zeros((1, dmodel), jnp.float32),
        "wqkv": s * jax.random.normal(ks[0], (dmodel, 3 * dmodel), jnp.float32),
        "wo":   s * jax.random.normal(ks[1], (dmodel, dmodel), jnp.float32),
        "ln2_g": jnp.ones((1, dmodel), jnp.float32),
        "ln2_b": jnp.zeros((1, dmodel), jnp.float32),
        "w1": s * jax.random.normal(ks[2], (dmodel, 4 * dmodel), jnp.float32),
        "b1": s * jax.random.normal(ks[3], (1, 4 * dmodel), jnp.float32),
        "w2": s * jax.random.normal(ks[4], (4 * dmodel, dmodel), jnp.float32),
        "b2": s * jax.random.normal(ks[5], (1, dmodel), jnp.float32),
    }


if __name__ == "__main__":
    B, S, D, H = 2, 8, 32, 4
    key = jax.random.PRNGKey(0)
    kx, km, kp = jax.random.split(key, 3)

    x = jax.random.normal(kx, (B, S, D), jnp.float32)
    # additive attention mask (composed with the in-kernel causal mask)
    attention_mask = 0.5 * jax.random.normal(km, (B, S, S), jnp.float32)
    params = init_params(kp, D)

    out = block_forward(x, attention_mask, params, H)
    out = jax.block_until_ready(out)

    ref = block_reference(x, attention_mask, params, H)
    assert out.shape == (B, S, D)
    # bf16 MXU operands / bf16 mask vs f32 reference -> relaxed tolerance
    assert jnp.allclose(out, ref, atol=2e-2, rtol=2e-2), "mismatch vs JAX reference"

    print("KERNEL_OK")
</pallas_src>

<mosaic_0001>
module attributes {stable_mosaic.version = 11 : i64} {
  func.func @_block_kernel(%arg0: i32, %arg1: i32, %arg2: memref<1x8x32xf32, #tpu.memory_space<vmem>>, %arg3: memref<1x1x8x8xbf16, #tpu.memory_space<vmem>>, %arg4: memref<1x32xf32, #tpu.memory_space<vmem>>, %arg5: memref<1x32xf32, #tpu.memory_space<vmem>>, %arg6: memref<32x96xbf16, #tpu.memory_space<vmem>>, %arg7: memref<32x32xbf16, #tpu.memory_space<vmem>>, %arg8: memref<1x32xf32, #tpu.memory_space<vmem>>, %arg9: memref<1x32xf32, #tpu.memory_space<vmem>>, %arg10: memref<32x128xbf16, #tpu.memory_space<vmem>>, %arg11: memref<1x128xf32, #tpu.memory_space<vmem>>, %arg12: memref<128x32xbf16, #tpu.memory_space<vmem>>, %arg13: memref<1x32xf32, #tpu.memory_space<vmem>>, %arg14: memref<1x8x32xf32, #tpu.memory_space<vmem>>, %arg15: memref<4x8x8xbf16, #tpu.memory_space<vmem>>, %arg16: memref<4x8x8xbf16, #tpu.memory_space<vmem>>, %arg17: memref<4x8x8xbf16, #tpu.memory_space<vmem>>, %arg18: memref<8x32xbf16, #tpu.memory_space<vmem>>, %arg19: memref<4x8x1xf32, #tpu.memory_space<vmem>>, %arg20: memref<4x8x1xf32, #tpu.memory_space<vmem>>, %arg21: memref<4x8x8xf32, #tpu.memory_space<vmem>>) attributes {dimension_semantics = [#tpu.dimension_semantics<parallel>, #tpu.dimension_semantics<arbitrary>], iteration_bounds = array<i64: 2, 1>, scalar_prefetch = 0 : i64, scratch_operands = 7 : i64, tpu.core_type = #tpu.core_type<tc>, window_params = [{transform_indices = @transform_0, window_bounds = array<i64: 1, 8, 32>}, {transform_indices = @transform_1, window_bounds = array<i64: 1, 1, 8, 8>}, {pipeline_mode = #tpu.pipeline_mode<synchronous>, transform_indices = @transform_2, window_bounds = array<i64: 1, 32>}, {pipeline_mode = #tpu.pipeline_mode<synchronous>, transform_indices = @transform_3, window_bounds = array<i64: 1, 32>}, {pipeline_mode = #tpu.pipeline_mode<synchronous>, transform_indices = @transform_4, window_bounds = array<i64: 32, 96>}, {pipeline_mode = #tpu.pipeline_mode<synchronous>, transform_indices = @transform_5, window_bounds = array<i64: 32, 32>}, {pipeline_mode = #tpu.pipeline_mode<synchronous>, transform_indices = @transform_6, window_bounds = array<i64: 1, 32>}, {pipeline_mode = #tpu.pipeline_mode<synchronous>, transform_indices = @transform_7, window_bounds = array<i64: 1, 32>}, {pipeline_mode = #tpu.pipeline_mode<synchronous>, transform_indices = @transform_8, window_bounds = array<i64: 32, 128>}, {pipeline_mode = #tpu.pipeline_mode<synchronous>, transform_indices = @transform_9, window_bounds = array<i64: 1, 128>}, {pipeline_mode = #tpu.pipeline_mode<synchronous>, transform_indices = @transform_10, window_bounds = array<i64: 128, 32>}, {pipeline_mode = #tpu.pipeline_mode<synchronous>, transform_indices = @transform_11, window_bounds = array<i64: 1, 32>}, {transform_indices = @transform_12, window_bounds = array<i64: 1, 8, 32>}]} {
    %c0 = arith.constant 0 : index
    %c0_0 = arith.constant 0 : index
    %c0_1 = arith.constant 0 : index
    %0 = vector.load %arg2[%c0, %c0_0, %c0_1] : memref<1x8x32xf32, #tpu.memory_space<vmem>>, vector<1x8x32xf32>
    %1 = vector.shape_cast %0 : vector<1x8x32xf32> to vector<8x32xf32>
    %c8_i32 = arith.constant 8 : i32
    %2 = arith.muli %arg1, %c8_i32 : i32
    %3 = tpu.assume_multiple %2, 8 : i32
    %c0_2 = arith.constant 0 : index
    %c0_3 = arith.constant 0 : index
    %4 = vector.load %arg4[%c0_2, %c0_3] : memref<1x32xf32, #tpu.memory_space<vmem>>, vector<1x32xf32>
    %5 = vector.shape_cast %4 : vector<1x32xf32> to vector<32xf32>
    %c0_4 = arith.constant 0 : index
    %c0_5 = arith.constant 0 : index
    %6 = vector.load %arg5[%c0_4, %c0_5] : memref<1x32xf32, #tpu.memory_space<vmem>>, vector<1x32xf32>
    %7 = vector.shape_cast %6 : vector<1x32xf32> to vector<32xf32>
    %cst = arith.constant dense<0.000000e+00> : vector<8xf32>
    %8 = vector.multi_reduction <add>, %1, %cst [1] : vector<8x32xf32> to vector<8xf32>
    %9 = vector.shape_cast %8 : vector<8xf32> to vector<8x1xf32>
    %cst_6 = arith.constant 3.200000e+01 : f32
    %10 = vector.broadcast %cst_6 : f32 to vector<8x1xf32>
    %11 = arith.divf %9, %10 : vector<8x1xf32>
    %12 = vector.broadcast %11 : vector<8x1xf32> to vector<8x32xf32>
    %13 = arith.subf %1, %12 : vector<8x32xf32>
    %14 = arith.mulf %13, %13 : vector<8x32xf32>
    %cst_7 = arith.constant dense<0.000000e+00> : vector<8xf32>
    %15 = vector.multi_reduction <add>, %14, %cst_7 [1] : vector<8x32xf32> to vector<8xf32>
    %16 = vector.shape_cast %15 : vector<8xf32> to vector<8x1xf32>
    %cst_8 = arith.constant 3.200000e+01 : f32
    %17 = vector.broadcast %cst_8 : f32 to vector<8x1xf32>
    %18 = arith.divf %16, %17 : vector<8x1xf32>
    %19 = vector.broadcast %11 : vector<8x1xf32> to vector<8x32xf32>
    %20 = arith.subf %1, %19 : vector<8x32xf32>
    %cst_9 = arith.constant 9.99999974E-6 : f32
    %21 = vector.broadcast %cst_9 : f32 to vector<8x1xf32>
    %22 = arith.addf %18, %21 : vector<8x1xf32>
    %23 = math.rsqrt %22 : vector<8x1xf32>
    %24 = vector.broadcast %23 : vector<8x1xf32> to vector<8x32xf32>
    %25 = arith.mulf %20, %24 : vector<8x32xf32>
    %26 = vector.shape_cast %5 : vector<32xf32> to vector<1x32xf32>
    %27 = vector.broadcast %26 : vector<1x32xf32> to vector<8x32xf32>
    %28 = arith.mulf %25, %27 : vector<8x32xf32>
    %29 = vector.shape_cast %7 : vector<32xf32> to vector<1x32xf32>
    %30 = vector.broadcast %29 : vector<1x32xf32> to vector<8x32xf32>
    %31 = arith.addf %28, %30 : vector<8x32xf32>
    %32 = arith.truncf %31 : vector<8x32xf32> to vector<8x32xbf16>
    %c0_10 = arith.constant 0 : index
    %c0_11 = arith.constant 0 : index
    %33 = vector.load %arg6[%c0_10, %c0_11] : memref<32x96xbf16, #tpu.memory_space<vmem>>, vector<32x96xbf16>
    %cst_12 = arith.constant dense<0.000000e+00> : vector<8x96xf32>
    %34 = tpu.matmul %32, %33, %cst_12 {dimension_numbers = #tpu.dot_dimension_numbers<[1], [0], [0], [1], [0, 0, 1, 1], [], []>} : vector<8x32xbf16>, vector<32x96xbf16>, vector<8x96xf32> -> vector<8x96xf32>
    %35 = vector.extract_strided_slice %34 {offsets = [0, 0], sizes = [8, 8], strides = [1, 1]} : vector<8x96xf32> to vector<8x8xf32>
    %cst_13 = arith.constant 0.353553385 : f32
    %36 = vector.broadcast %cst_13 : f32 to vector<8x8xf32>
    %37 = arith.mulf %35, %36 : vector<8x8xf32>
    %38 = arith.truncf %37 : vector<8x8xf32> to vector<8x8xbf16>
    %c0_14 = arith.constant 0 : index
    %c0_15 = arith.constant 0 : index
    %c0_16 = arith.constant 0 : index
    %39 = vector.load %arg15[%c0_14, %c0_15, %c0_16] : memref<4x8x8xbf16, #tpu.memory_space<vmem>>, vector<1x8x8xbf16>
    %40 = vector.shape_cast %39 : vector<1x8x8xbf16> to vector<8x8xbf16>
    %41 = vector.shape_cast %38 : vector<8x8xbf16> to vector<1x8x8xbf16>
    tpu.vector_store %arg15[%c0_14, %c0_15, %c0_16], %41 {strides = array<i32>} : memref<4x8x8xbf16, #tpu.memory_space<vmem>>, vector<1x8x8xbf16>,
    %42 = vector.extract_strided_slice %34 {offsets = [0, 32], sizes = [8, 8], strides = [1, 1]} : vector<8x96xf32> to vector<8x8xf32>
    %43 = arith.truncf %42 : vector<8x8xf32> to vector<8x8xbf16>
    %c0_17 = arith.constant 0 : index
    %44 = arith.index_cast %3 : i32 to index
    %c0_18 = arith.constant 0 : index
    %45 = vector.load %arg16[%c0_17, %44, %c0_18] : memref<4x8x8xbf16, #tpu.memory_space<vmem>>, vector<1x8x8xbf16>
    %46 = vector.shape_cast %45 : vector<1x8x8xbf16> to vector<8x8xbf16>
    %47 = vector.shape_cast %43 : vector<8x8xbf16> to vector<1x8x8xbf16>
    tpu.vector_store %arg16[%c0_17, %44, %c0_18], %47 {strides = array<i32>} : memref<4x8x8xbf16, #tpu.memory_space<vmem>>, vector<1x8x8xbf16>,
    %48 = vector.extract_strided_slice %34 {offsets = [0, 64], sizes = [8, 8], strides = [1, 1]} : vector<8x96xf32> to vector<8x8xf32>
    %49 = arith.truncf %48 : vector<8x8xf32> to vector<8x8xbf16>
    %c0_19 = arith.constant 0 : index
    %50 = arith.index_cast %3 : i32 to index
    %c0_20 = arith.constant 0 : index
    %51 = vector.load %arg17[%c0_19, %50, %c0_20] : memref<4x8x8xbf16, #tpu.memory_space<vmem>>, vector<1x8x8xbf16>
    %52 = vector.shape_cast %51 : vector<1x8x8xbf16> to vector<8x8xbf16>
    %53 = vector.shape_cast %49 : vector<8x8xbf16> to vector<1x8x8xbf16>
    tpu.vector_store %arg17[%c0_19, %50, %c0_20], %53 {strides = array<i32>} : memref<4x8x8xbf16, #tpu.memory_space<vmem>>, vector<1x8x8xbf16>,
    %54 = vector.extract_strided_slice %34 {offsets = [0, 8], sizes = [8, 8], strides = [1, 1]} : vector<8x96xf32> to vector<8x8xf32>
    %cst_21 = arith.constant 0.353553385 : f32
    %55 = vector.broadcast %cst_21 : f32 to vector<8x8xf32>
    %56 = arith.mulf %54, %55 : vector<8x8xf32>
    %57 = arith.truncf %56 : vector<8x8xf32> to vector<8x8xbf16>
    %c1 = arith.constant 1 : index
    %c0_22 = arith.constant 0 : index
    %c0_23 = arith.constant 0 : index
    %58 = vector.load %arg15[%c1, %c0_22, %c0_23] : memref<4x8x8xbf16, #tpu.memory_space<vmem>>, vector<1x8x8xbf16>
    %59 = vector.shape_cast %58 : vector<1x8x8xbf16> to vector<8x8xbf16>
    %60 = vector.shape_cast %57 : vector<8x8xbf16> to vector<1x8x8xbf16>
    tpu.vector_store %arg15[%c1, %c0_22, %c0_23], %60 {strides = array<i32>} : memref<4x8x8xbf16, #tpu.memory_space<vmem>>, vector<1x8x8xbf16>,
    %61 = vector.extract_strided_slice %34 {offsets = [0, 40], sizes = [8, 8], strides = [1, 1]} : vector<8x96xf32> to vector<8x8xf32>
    %62 = arith.truncf %61 : vector<8x8xf32> to vector<8x8xbf16>
    %c1_24 = arith.constant 1 : index
    %63 = arith.index_cast %3 : i32 to index
    %c0_25 = arith.constant 0 : index
    %64 = vector.load %arg16[%c1_24, %63, %c0_25] : memref<4x8x8xbf16, #tpu.memory_space<vmem>>, vector<1x8x8xbf16>
    %65 = vector.shape_cast %64 : vector<1x8x8xbf16> to vector<8x8xbf16>
    %66 = vector.shape_cast %62 : vector<8x8xbf16> to vector<1x8x8xbf16>
    tpu.vector_store %arg16[%c1_24, %63, %c0_25], %66 {strides = array<i32>} : memref<4x8x8xbf16, #tpu.memory_space<vmem>>, vector<1x8x8xbf16>,
    %67 = vector.extract_strided_slice %34 {offsets = [0, 72], sizes = [8, 8], strides = [1, 1]} : vector<8x96xf32> to vector<8x8xf32>
    %68 = arith.truncf %67 : vector<8x8xf32> to vector<8x8xbf16>
    %c1_26 = arith.constant 1 : index
    %69 = arith.index_cast %3 : i32 to index
    %c0_27 = arith.constant 0 : index
    %70 = vector.load %arg17[%c1_26, %69, %c0_27] : memref<4x8x8xbf16, #tpu.memory_space<vmem>>, vector<1x8x8xbf16>
    %71 = vector.shape_cast %70 : vector<1x8x8xbf16> to vector<8x8xbf16>
    %72 = vector.shape_cast %68 : vector<8x8xbf16> to vector<1x8x8xbf16>
    tpu.vector_store %arg17[%c1_26, %69, %c0_27], %72 {strides = array<i32>} : memref<4x8x8xbf16, #tpu.memory_space<vmem>>, vector<1x8x8xbf16>,
    %73 = vector.extract_strided_slice %34 {offsets = [0, 16], sizes = [8, 8], strides = [1, 1]} : vector<8x96xf32> to vector<8x8xf32>
    %cst_28 = arith.constant 0.353553385 : f32
    %74 = vector.broadcast %cst_28 : f32 to vector<8x8xf32>
    %75 = arith.mulf %73, %74 : vector<8x8xf32>
    %76 = arith.truncf %75 : vector<8x8xf32> to vector<8x8xbf16>
    %c2 = arith.constant 2 : index
    %c0_29 = arith.constant 0 : index
    %c0_30 = arith.constant 0 : index
    %77 = vector.load %arg15[%c2, %c0_29, %c0_30] : memref<4x8x8xbf16, #tpu.memory_space<vmem>>, vector<1x8x8xbf16>
    %78 = vector.shape_cast %77 : vector<1x8x8xbf16> to vector<8x8xbf16>
    %79 = vector.shape_cast %76 : vector<8x8xbf16> to vector<1x8x8xbf16>
    tpu.vector_store %arg15[%c2, %c0_29, %c0_30], %79 {strides = array<i32>} : memref<4x8x8xbf16, #tpu.memory_space<vmem>>, vector<1x8x8xbf16>,
    %80 = vector.extract_strided_slice %34 {offsets = [0, 48], sizes = [8, 8], strides = [1, 1]} : vector<8x96xf32> to vector<8x8xf32>
    %81 = arith.truncf %80 : vector<8x8xf32> to vector<8x8xbf16>
    %c2_31 = arith.constant 2 : index
    %82 = arith.index_cast %3 : i32 to index
    %c0_32 = arith.constant 0 : index
    %83 = vector.load %arg16[%c2_31, %82, %c0_32] : memref<4x8x8xbf16, #tpu.memory_space<vmem>>, vector<1x8x8xbf16>
    %84 = vector.shape_cast %83 : vector<1x8x8xbf16> to vector<8x8xbf16>
    %85 = vector.shape_cast %81 : vector<8x8xbf16> to vector<1x8x8xbf16>
    tpu.vector_store %arg16[%c2_31, %82, %c0_32], %85 {strides = array<i32>} : memref<4x8x8xbf16, #tpu.memory_space<vmem>>, vector<1x8x8xbf16>,
    %86 = vector.extract_strided_slice %34 {offsets = [0, 80], sizes = [8, 8], strides = [1, 1]} : vector<8x96xf32> to vector<8x8xf32>
    %87 = arith.truncf %86 : vector<8x8xf32> to vector<8x8xbf16>
    %c2_33 = arith.constant 2 : index
    %88 = arith.index_cast %3 : i32 to index
    %c0_34 = arith.constant 0 : index
    %89 = vector.load %arg17[%c2_33, %88, %c0_34] : memref<4x8x8xbf16, #tpu.memory_space<vmem>>, vector<1x8x8xbf16>
    %90 = vector.shape_cast %89 : vector<1x8x8xbf16> to vector<8x8xbf16>
    %91 = vector.shape_cast %87 : vector<8x8xbf16> to vector<1x8x8xbf16>
    tpu.vector_store %arg17[%c2_33, %88, %c0_34], %91 {strides = array<i32>} : memref<4x8x8xbf16, #tpu.memory_space<vmem>>, vector<1x8x8xbf16>,
    %92 = vector.extract_strided_slice %34 {offsets = [0, 24], sizes = [8, 8], strides = [1, 1]} : vector<8x96xf32> to vector<8x8xf32>
    %cst_35 = arith.constant 0.353553385 : f32
    %93 = vector.broadcast %cst_35 : f32 to vector<8x8xf32>
    %94 = arith.mulf %92, %93 : vector<8x8xf32>
    %95 = arith.truncf %94 : vector<8x8xf32> to vector<8x8xbf16>
    %c3 = arith.constant 3 : index
    %c0_36 = arith.constant 0 : index
    %c0_37 = arith.constant 0 : index
    %96 = vector.load %arg15[%c3, %c0_36, %c0_37] : memref<4x8x8xbf16, #tpu.memory_space<vmem>>, vector<1x8x8xbf16>
    %97 = vector.shape_cast %96 : vector<1x8x8xbf16> to vector<8x8xbf16>
    %98 = vector.shape_cast %95 : vector<8x8xbf16> to vector<1x8x8xbf16>
    tpu.vector_store %arg15[%c3, %c0_36, %c0_37], %98 {strides = array<i32>} : memref<4x8x8xbf16, #tpu.memory_space<vmem>>, vector<1x8x8xbf16>,
    %99 = vector.extract_strided_slice %34 {offsets = [0, 56], sizes = [8, 8], strides = [1, 1]} : vector<8x96xf32> to vector<8x8xf32>
    %100 = arith.truncf %99 : vector<8x8xf32> to vector<8x8xbf16>
    %c3_38 = arith.constant 3 : index
    %101 = arith.index_cast %3 : i32 to index
    %c0_39 = arith.constant 0 : index
    %102 = vector.load %arg16[%c3_38, %101, %c0_39] : memref<4x8x8xbf16, #tpu.memory_space<vmem>>, vector<1x8x8xbf16>
    %103 = vector.shape_cast %102 : vector<1x8x8xbf16> to vector<8x8xbf16>
    %104 = vector.shape_cast %100 : vector<8x8xbf16> to vector<1x8x8xbf16>
    tpu.vector_store %arg16[%c3_38, %101, %c0_39], %104 {strides = array<i32>} : memref<4x8x8xbf16, #tpu.memory_space<vmem>>, vector<1x8x8xbf16>,
    %105 = vector.extract_strided_slice %34 {offsets = [0, 88], sizes = [8, 8], strides = [1, 1]} : vector<8x96xf32> to vector<8x8xf32>
    %106 = arith.truncf %105 : vector<8x8xf32> to vector<8x8xbf16>
    %c3_40 = arith.constant 3 : index
    %107 = arith.index_cast %3 : i32 to index
    %c0_41 = arith.constant 0 : index
    %108 = vector.load %arg17[%c3_40, %107, %c0_41] : memref<4x8x8xbf16, #tpu.memory_space<vmem>>, vector<1x8x8xbf16>
    %109 = vector.shape_cast %108 : vector<1x8x8xbf16> to vector<8x8xbf16>
    %110 = vector.shape_cast %106 : vector<8x8xbf16> to vector<1x8x8xbf16>
    tpu.vector_store %arg17[%c3_40, %107, %c0_41], %110 {strides = array<i32>} : memref<4x8x8xbf16, #tpu.memory_space<vmem>>, vector<1x8x8xbf16>,
    %c0_42 = arith.constant 0 : index
    %c0_43 = arith.constant 0 : index
    %c0_44 = arith.constant 0 : index
    %111 = vector.load %arg15[%c0_42, %c0_43, %c0_44] : memref<4x8x8xbf16, #tpu.memory_space<vmem>>, vector<4x8x8xbf16>
    %112 = tpu.iota {dimensions = array<i32: 0>} : vector<8x8xi32>
    %113 = tpu.iota {dimensions = array<i32: 1>} : vector<8x8xi32>
    %114 = arith.cmpi sle, %113, %112 : vector<8x8xi32>
    %cst_45 = arith.constant 0.000000e+00 : f32
    %cst_46 = arith.constant -1.000000e+30 : f32
    %115 = vector.broadcast %cst_45 : f32 to vector<8x8xf32>
    %116 = vector.broadcast %cst_46 : f32 to vector<8x8xf32>
    %117 = arith.select %114, %115, %116 : vector<8x8xi1>, vector<8x8xf32>
    %c0_47 = arith.constant 0 : index
    %118 = arith.index_cast %arg1 : i32 to index
    %c0_48 = arith.constant 0 : index
    %c0_49 = arith.constant 0 : index
    %119 = vector.load %arg3[%c0_47, %118, %c0_48, %c0_49] : memref<1x1x8x8xbf16, #tpu.memory_space<vmem>>, vector<1x1x8x8xbf16>
    %120 = vector.shape_cast %119 : vector<1x1x8x8xbf16> to vector<8x8xbf16>
    %121 = arith.extf %120 : vector<8x8xbf16> to vector<8x8xf32>
    %122 = arith.addf %117, %121 : vector<8x8xf32>
    %c0_50 = arith.constant 0 : index
    %123 = arith.index_cast %3 : i32 to index
    %c0_51 = arith.constant 0 : index
    %124 = vector.load %arg16[%c0_50, %123, %c0_51] : memref<4x8x8xbf16, #tpu.memory_space<vmem>>, vector<4x8x8xbf16>
    %c0_52 = arith.constant 0 : index
    %125 = arith.index_cast %3 : i32 to index
    %c0_53 = arith.constant 0 : index
    %126 = vector.load %arg17[%c0_52, %125, %c0_53] : memref<4x8x8xbf16, #tpu.memory_space<vmem>>, vector<4x8x8xbf16>
    "tpu.trace_start"() <{level = 10 : i32, message = "hqd,hkd->hqk"}> : () -> ()
    %cst_54 = arith.constant dense<0.000000e+00> : vector<4x8x8xf32>
    %127 = tpu.matmul %111, %124, %cst_54 {dimension_numbers = #tpu.dot_dimension_numbers<[2], [2], [1], [1], [0, 0, 0, 1, 1, 1], [0], [0]>} : vector<4x8x8xbf16>, vector<4x8x8xbf16>, vector<4x8x8xf32> -> vector<4x8x8xf32>
    "tpu.trace_stop"() : () -> ()
    %128 = vector.shape_cast %122 : vector<8x8xf32> to vector<1x8x8xf32>
    %129 = vector.broadcast %128 : vector<1x8x8xf32> to vector<4x8x8xf32>
    %130 = arith.addf %127, %129 : vector<4x8x8xf32>
    %cst_55 = arith.constant dense<0xFF800000> : vector<4x8xf32>
    %131 = vector.multi_reduction <maximumf>, %130, %cst_55 [2] : vector<4x8x8xf32> to vector<4x8xf32>
    %132 = vector.shape_cast %131 : vector<4x8xf32> to vector<4x8x1xf32>
    %133 = vector.broadcast %132 : vector<4x8x1xf32> to vector<4x8x8xf32>
    %134 = arith.subf %130, %133 : vector<4x8x8xf32>
    %135 = math.exp %134 : vector<4x8x8xf32>
    %c0_56 = arith.constant 0 : index
    %c0_57 = arith.constant 0 : index
    %c0_58 = arith.constant 0 : index
    %136 = vector.load %arg19[%c0_56, %c0_57, %c0_58] : memref<4x8x1xf32, #tpu.memory_space<vmem>>, vector<4x8x1xf32>
    tpu.vector_store %arg19[%c0_56, %c0_57, %c0_58], %132 {strides = array<i32>} : memref<4x8x1xf32, #tpu.memory_space<vmem>>, vector<4x8x1xf32>,
    %cst_59 = arith.constant dense<0.000000e+00> : vector<4x8xf32>
    %137 = vector.multi_reduction <add>, %135, %cst_59 [2] : vector<4x8x8xf32> to vector<4x8xf32>
    %138 = vector.shape_cast %137 : vector<4x8xf32> to vector<4x8x1xf32>
    %c0_60 = arith.constant 0 : index
    %c0_61 = arith.constant 0 : index
    %c0_62 = arith.constant 0 : index
    %139 = vector.load %arg20[%c0_60, %c0_61, %c0_62] : memref<4x8x1xf32, #tpu.memory_space<vmem>>, vector<4x8x1xf32>
    tpu.vector_store %arg20[%c0_60, %c0_61, %c0_62], %138 {strides = array<i32>} : memref<4x8x1xf32, #tpu.memory_space<vmem>>, vector<4x8x1xf32>,
    %140 = arith.truncf %135 : vector<4x8x8xf32> to vector<4x8x8xbf16>
    "tpu.trace_start"() <{level = 10 : i32, message = "hqk,hkd->hqd"}> : () -> ()
    %cst_63 = arith.constant dense<0.000000e+00> : vector<4x8x8xf32>
    %141 = tpu.matmul %140, %126, %cst_63 {dimension_numbers = #tpu.dot_dimension_numbers<[2], [1], [1], [2], [0, 0, 0, 1, 1, 2], [0], [0]>} : vector<4x8x8xbf16>, vector<4x8x8xbf16>, vector<4x8x8xf32> -> vector<4x8x8xf32>
    "tpu.trace_stop"() : () -> ()
    %c0_64 = arith.constant 0 : index
    %c0_65 = arith.constant 0 : index
    %c0_66 = arith.constant 0 : index
    %142 = vector.load %arg21[%c0_64, %c0_65, %c0_66] : memref<4x8x8xf32, #tpu.memory_space<vmem>>, vector<4x8x8xf32>
    tpu.vector_store %arg21[%c0_64, %c0_65, %c0_66], %141 {strides = array<i32>} : memref<4x8x8xf32, #tpu.memory_space<vmem>>, vector<4x8x8xf32>,
    %c0_i32 = arith.constant 0 : i32
    %c0_i32_67 = arith.constant 0 : i32
    %143 = arith.subi %arg1, %c0_i32_67 : i32
    %144 = arith.addi %c0_i32_67, %143 : i32
    %c1_i32 = arith.constant 1 : i32
    scf.for %arg22 = %c0_i32_67 to %144 step %c1_i32  : i32 {
      %c8_i32_107 = arith.constant 8 : i32
      %220 = arith.muli %arg22, %c8_i32_107 : i32
      %221 = tpu.assume_multiple %220, 8 : i32
      %c0_108 = arith.constant 0 : index
      %222 = arith.index_cast %221 : i32 to index
      %c0_109 = arith.constant 0 : index
      %223 = vector.load %arg16[%c0_108, %222, %c0_109] : memref<4x8x8xbf16, #tpu.memory_space<vmem>>, vector<4x8x8xbf16>
      %c0_110 = arith.constant 0 : index
      %224 = arith.index_cast %221 : i32 to index
      %c0_111 = arith.constant 0 : index
      %225 = vector.load %arg17[%c0_110, %224, %c0_111] : memref<4x8x8xbf16, #tpu.memory_space<vmem>>, vector<4x8x8xbf16>
      "tpu.trace_start"() <{level = 10 : i32, message = "hqd,hkd->hqk"}> : () -> ()
      %cst_112 = arith.constant dense<0.000000e+00> : vector<4x8x8xf32>
      %226 = tpu.matmul %111, %223, %cst_112 {dimension_numbers = #tpu.dot_dimension_numbers<[2], [2], [1], [1], [0, 0, 0, 1, 1, 1], [0], [0]>} : vector<4x8x8xbf16>, vector<4x8x8xbf16>, vector<4x8x8xf32> -> vector<4x8x8xf32>
      "tpu.trace_stop"() : () -> ()
      %c0_113 = arith.constant 0 : index
      %227 = arith.index_cast %arg22 : i32 to index
      %c0_114 = arith.constant 0 : index
      %c0_115 = arith.constant 0 : index
      %228 = vector.load %arg3[%c0_113, %227, %c0_114, %c0_115] : memref<1x1x8x8xbf16, #tpu.memory_space<vmem>>, vector<1x1x8x8xbf16>
      %229 = vector.shape_cast %228 : vector<1x1x8x8xbf16> to vector<8x8xbf16>
      %230 = arith.extf %229 : vector<8x8xbf16> to vector<8x8xf32>
      %231 = vector.shape_cast %230 : vector<8x8xf32> to vector<1x8x8xf32>
      %232 = vector.broadcast %231 : vector<1x8x8xf32> to vector<4x8x8xf32>
      %233 = arith.addf %226, %232 : vector<4x8x8xf32>
      %c0_116 = arith.constant 0 : index
      %c0_117 = arith.constant 0 : index
      %c0_118 = arith.constant 0 : index
      %234 = vector.load %arg19[%c0_116, %c0_117, %c0_118] : memref<4x8x1xf32, #tpu.memory_space<vmem>>, vector<4x8x1xf32>
      %cst_119 = arith.constant dense<0xFF800000> : vector<4x8xf32>
      %235 = vector.multi_reduction <maximumf>, %233, %cst_119 [2] : vector<4x8x8xf32> to vector<4x8xf32>
      %236 = vector.shape_cast %235 : vector<4x8xf32> to vector<4x8x1xf32>
      %237 = arith.maximumf %234, %236 : vector<4x8x1xf32>
      %238 = arith.subf %234, %237 : vector<4x8x1xf32>
      %239 = math.exp %238 : vector<4x8x1xf32>
      %240 = vector.broadcast %237 : vector<4x8x1xf32> to vector<4x8x8xf32>
      %241 = arith.subf %233, %240 : vector<4x8x8xf32>
      %242 = math.exp %241 : vector<4x8x8xf32>
      %c0_120 = arith.constant 0 : index
      %c0_121 = arith.constant 0 : index
      %c0_122 = arith.constant 0 : index
      %243 = vector.load %arg20[%c0_120, %c0_121, %c0_122] : memref<4x8x1xf32, #tpu.memory_space<vmem>>, vector<4x8x1xf32>
      %244 = arith.mulf %239, %243 : vector<4x8x1xf32>
      %cst_123 = arith.constant dense<0.000000e+00> : vector<4x8xf32>
      %245 = vector.multi_reduction <add>, %242, %cst_123 [2] : vector<4x8x8xf32> to vector<4x8xf32>
      %246 = vector.shape_cast %245 : vector<4x8xf32> to vector<4x8x1xf32>
      %247 = arith.addf %244, %246 : vector<4x8x1xf32>
      %c0_124 = arith.constant 0 : index
      %c0_125 = arith.constant 0 : index
      %c0_126 = arith.constant 0 : index
      %248 = vector.load %arg20[%c0_124, %c0_125, %c0_126] : memref<4x8x1xf32, #tpu.memory_space<vmem>>, vector<4x8x1xf32>
      tpu.vector_store %arg20[%c0_124, %c0_125, %c0_126], %247 {strides = array<i32>} : memref<4x8x1xf32, #tpu.memory_space<vmem>>, vector<4x8x1xf32>,
      %c0_127 = arith.constant 0 : index
      %c0_128 = arith.constant 0 : index
      %c0_129 = arith.constant 0 : index
      %249 = vector.load %arg21[%c0_127, %c0_128, %c0_129] : memref<4x8x8xf32, #tpu.memory_space<vmem>>, vector<4x8x8xf32>
      %250 = vector.broadcast %239 : vector<4x8x1xf32> to vector<4x8x8xf32>
      %251 = arith.mulf %250, %249 : vector<4x8x8xf32>
      %252 = arith.truncf %242 : vector<4x8x8xf32> to vector<4x8x8xbf16>
      "tpu.trace_start"() <{level = 10 : i32, message = "hqk,hkd->hqd"}> : () -> ()
      %cst_130 = arith.constant dense<0.000000e+00> : vector<4x8x8xf32>
      %253 = tpu.matmul %252, %225, %cst_130 {dimension_numbers = #tpu.dot_dimension_numbers<[2], [1], [1], [2], [0, 0, 0, 1, 1, 2], [0], [0]>} : vector<4x8x8xbf16>, vector<4x8x8xbf16>, vector<4x8x8xf32> -> vector<4x8x8xf32>
      "tpu.trace_stop"() : () -> ()
      %254 = arith.addf %251, %253 : vector<4x8x8xf32>
      %c0_131 = arith.constant 0 : index
      %c0_132 = arith.constant 0 : index
      %c0_133 = arith.constant 0 : index
      %255 = vector.load %arg21[%c0_131, %c0_132, %c0_133] : memref<4x8x8xf32, #tpu.memory_space<vmem>>, vector<4x8x8xf32>
      tpu.vector_store %arg21[%c0_131, %c0_132, %c0_133], %254 {strides = array<i32>} : memref<4x8x8xf32, #tpu.memory_space<vmem>>, vector<4x8x8xf32>,
      %c0_134 = arith.constant 0 : index
      %c0_135 = arith.constant 0 : index
      %c0_136 = arith.constant 0 : index
      %256 = vector.load %arg19[%c0_134, %c0_135, %c0_136] : memref<4x8x1xf32, #tpu.memory_space<vmem>>, vector<4x8x1xf32>
      tpu.vector_store %arg19[%c0_134, %c0_135, %c0_136], %237 {strides = array<i32>} : memref<4x8x1xf32, #tpu.memory_space<vmem>>, vector<4x8x1xf32>,
    }
    %c0_68 = arith.constant 0 : index
    %c0_69 = arith.constant 0 : index
    %c0_70 = arith.constant 0 : index
    %145 = vector.load %arg21[%c0_68, %c0_69, %c0_70] : memref<4x8x8xf32, #tpu.memory_space<vmem>>, vector<4x8x8xf32>
    %c0_71 = arith.constant 0 : index
    %c0_72 = arith.constant 0 : index
    %c0_73 = arith.constant 0 : index
    %146 = vector.load %arg20[%c0_71, %c0_72, %c0_73] : memref<4x8x1xf32, #tpu.memory_space<vmem>>, vector<4x8x1xf32>
    %147 = tpu.reciprocal %146 {approx = true} : vector<4x8x1xf32> -> vector<4x8x1xf32>
    %148 = vector.broadcast %147 : vector<4x8x1xf32> to vector<4x8x8xf32>
    %149 = arith.mulf %145, %148 : vector<4x8x8xf32>
    %150 = vector.extract_strided_slice %149 {offsets = [0, 0, 0], sizes = [1, 8, 8], strides = [1, 1, 1]} : vector<4x8x8xf32> to vector<1x8x8xf32>
    %151 = vector.shape_cast %150 : vector<1x8x8xf32> to vector<8x8xf32>
    %152 = arith.truncf %151 : vector<8x8xf32> to vector<8x8xbf16>
    %c0_74 = arith.constant 0 : index
    %c0_75 = arith.constant 0 : index
    %153 = vector.load %arg18[%c0_74, %c0_75] : memref<8x32xbf16, #tpu.memory_space<vmem>>, vector<8x8xbf16>
    tpu.vector_store %arg18[%c0_74, %c0_75], %152 {strides = array<i32>} : memref<8x32xbf16, #tpu.memory_space<vmem>>, vector<8x8xbf16>,
    %154 = vector.extract_strided_slice %149 {offsets = [1, 0, 0], sizes = [1, 8, 8], strides = [1, 1, 1]} : vector<4x8x8xf32> to vector<1x8x8xf32>
    %155 = vector.shape_cast %154 : vector<1x8x8xf32> to vector<8x8xf32>
    %156 = arith.truncf %155 : vector<8x8xf32> to vector<8x8xbf16>
    %c0_76 = arith.constant 0 : index
    %c8 = arith.constant 8 : index
    %157 = vector.load %arg18[%c0_76, %c8] : memref<8x32xbf16, #tpu.memory_space<vmem>>, vector<8x8xbf16>
    tpu.vector_store %arg18[%c0_76, %c8], %156 {strides = array<i32>} : memref<8x32xbf16, #tpu.memory_space<vmem>>, vector<8x8xbf16>,
    %158 = vector.extract_strided_slice %149 {offsets = [2, 0, 0], sizes = [1, 8, 8], strides = [1, 1, 1]} : vector<4x8x8xf32> to vector<1x8x8xf32>
    %159 = vector.shape_cast %158 : vector<1x8x8xf32> to vector<8x8xf32>
    %160 = arith.truncf %159 : vector<8x8xf32> to vector<8x8xbf16>
    %c0_77 = arith.constant 0 : index
    %c16 = arith.constant 16 : index
    %161 = vector.load %arg18[%c0_77, %c16] : memref<8x32xbf16, #tpu.memory_space<vmem>>, vector<8x8xbf16>
    tpu.vector_store %arg18[%c0_77, %c16], %160 {strides = array<i32>} : memref<8x32xbf16, #tpu.memory_space<vmem>>, vector<8x8xbf16>,
    %162 = vector.extract_strided_slice %149 {offsets = [3, 0, 0], sizes = [1, 8, 8], strides = [1, 1, 1]} : vector<4x8x8xf32> to vector<1x8x8xf32>
    %163 = vector.shape_cast %162 : vector<1x8x8xf32> to vector<8x8xf32>
    %164 = arith.truncf %163 : vector<8x8xf32> to vector<8x8xbf16>
    %c0_78 = arith.constant 0 : index
    %c24 = arith.constant 24 : index
    %165 = vector.load %arg18[%c0_78, %c24] : memref<8x32xbf16, #tpu.memory_space<vmem>>, vector<8x8xbf16>
    tpu.vector_store %arg18[%c0_78, %c24], %164 {strides = array<i32>} : memref<8x32xbf16, #tpu.memory_space<vmem>>, vector<8x8xbf16>,
    %c0_79 = arith.constant 0 : index
    %c0_80 = arith.constant 0 : index
    %166 = vector.load %arg18[%c0_79, %c0_80] : memref<8x32xbf16, #tpu.memory_space<vmem>>, vector<8x32xbf16>
    %c0_81 = arith.constant 0 : index
    %c0_82 = arith.constant 0 : index
    %167 = vector.load %arg7[%c0_81, %c0_82] : memref<32x32xbf16, #tpu.memory_space<vmem>>, vector<32x32xbf16>
    %cst_83 = arith.constant dense<0.000000e+00> : vector<8x32xf32>
    %168 = tpu.matmul %166, %167, %cst_83 {dimension_numbers = #tpu.dot_dimension_numbers<[1], [0], [0], [1], [0, 0, 1, 1], [], []>} : vector<8x32xbf16>, vector<32x32xbf16>, vector<8x32xf32> -> vector<8x32xf32>
    %169 = arith.addf %1, %168 : vector<8x32xf32>
    %c0_84 = arith.constant 0 : index
    %c0_85 = arith.constant 0 : index
    %170 = vector.load %arg8[%c0_84, %c0_85] : memref<1x32xf32, #tpu.memory_space<vmem>>, vector<1x32xf32>
    %171 = vector.shape_cast %170 : vector<1x32xf32> to vector<32xf32>
    %c0_86 = arith.constant 0 : index
    %c0_87 = arith.constant 0 : index
    %172 = vector.load %arg9[%c0_86, %c0_87] : memref<1x32xf32, #tpu.memory_space<vmem>>, vector<1x32xf32>
    %173 = vector.shape_cast %172 : vector<1x32xf32> to vector<32xf32>
    %cst_88 = arith.constant dense<0.000000e+00> : vector<8xf32>
    %174 = vector.multi_reduction <add>, %169, %cst_88 [1] : vector<8x32xf32> to vector<8xf32>
    %175 = vector.shape_cast %174 : vector<8xf32> to vector<8x1xf32>
    %cst_89 = arith.constant 3.200000e+01 : f32
    %176 = vector.broadcast %cst_89 : f32 to vector<8x1xf32>
    %177 = arith.divf %175, %176 : vector<8x1xf32>
    %178 = vector.broadcast %177 : vector<8x1xf32> to vector<8x32xf32>
    %179 = arith.subf %169, %178 : vector<8x32xf32>
    %180 = arith.mulf %179, %179 : vector<8x32xf32>
    %cst_90 = arith.constant dense<0.000000e+00> : vector<8xf32>
    %181 = vector.multi_reduction <add>, %180, %cst_90 [1] : vector<8x32xf32> to vector<8xf32>
    %182 = vector.shape_cast %181 : vector<8xf32> to vector<8x1xf32>
    %cst_91 = arith.constant 3.200000e+01 : f32
    %183 = vector.broadcast %cst_91 : f32 to vector<8x1xf32>
    %184 = arith.divf %182, %183 : vector<8x1xf32>
    %185 = vector.broadcast %177 : vector<8x1xf32> to vector<8x32xf32>
    %186 = arith.subf %169, %185 : vector<8x32xf32>
    %cst_92 = arith.constant 9.99999974E-6 : f32
    %187 = vector.broadcast %cst_92 : f32 to vector<8x1xf32>
    %188 = arith.addf %184, %187 : vector<8x1xf32>
    %189 = math.rsqrt %188 : vector<8x1xf32>
    %190 = vector.broadcast %189 : vector<8x1xf32> to vector<8x32xf32>
    %191 = arith.mulf %186, %190 : vector<8x32xf32>
    %192 = vector.shape_cast %171 : vector<32xf32> to vector<1x32xf32>
    %193 = vector.broadcast %192 : vector<1x32xf32> to vector<8x32xf32>
    %194 = arith.mulf %191, %193 : vector<8x32xf32>
    %195 = vector.shape_cast %173 : vector<32xf32> to vector<1x32xf32>
    %196 = vector.broadcast %195 : vector<1x32xf32> to vector<8x32xf32>
    %197 = arith.addf %194, %196 : vector<8x32xf32>
    %198 = arith.truncf %197 : vector<8x32xf32> to vector<8x32xbf16>
    %c0_93 = arith.constant 0 : index
    %c0_94 = arith.constant 0 : index
    %199 = vector.load %arg10[%c0_93, %c0_94] : memref<32x128xbf16, #tpu.memory_space<vmem>>, vector<32x128xbf16>
    %cst_95 = arith.constant dense<0.000000e+00> : vector<8x128xf32>
    %200 = tpu.matmul %198, %199, %cst_95 {dimension_numbers = #tpu.dot_dimension_numbers<[1], [0], [0], [1], [0, 0, 1, 1], [], []>} : vector<8x32xbf16>, vector<32x128xbf16>, vector<8x128xf32> -> vector<8x128xf32>
    %c0_96 = arith.constant 0 : index
    %c0_97 = arith.constant 0 : index
    %201 = vector.load %arg11[%c0_96, %c0_97] : memref<1x128xf32, #tpu.memory_space<vmem>>, vector<1x128xf32>
    %202 = vector.shape_cast %201 : vector<1x128xf32> to vector<128xf32>
    %203 = vector.shape_cast %202 : vector<128xf32> to vector<1x128xf32>
    %204 = vector.broadcast %203 : vector<1x128xf32> to vector<8x128xf32>
    %205 = arith.addf %200, %204 : vector<8x128xf32>
    %cst_98 = arith.constant 0.000000e+00 : f32
    %206 = vector.broadcast %cst_98 : f32 to vector<8x128xf32>
    %207 = arith.maximumf %205, %206 : vector<8x128xf32>
    %208 = arith.truncf %207 : vector<8x128xf32> to vector<8x128xbf16>
    %c0_99 = arith.constant 0 : index
    %c0_100 = arith.constant 0 : index
    %209 = vector.load %arg12[%c0_99, %c0_100] : memref<128x32xbf16, #tpu.memory_space<vmem>>, vector<128x32xbf16>
    %cst_101 = arith.constant dense<0.000000e+00> : vector<8x32xf32>
    %210 = tpu.matmul %208, %209, %cst_101 {dimension_numbers = #tpu.dot_dimension_numbers<[1], [0], [0], [1], [0, 0, 1, 1], [], []>} : vector<8x128xbf16>, vector<128x32xbf16>, vector<8x32xf32> -> vector<8x32xf32>
    %c0_102 = arith.constant 0 : index
    %c0_103 = arith.constant 0 : index
    %211 = vector.load %arg13[%c0_102, %c0_103] : memref<1x32xf32, #tpu.memory_space<vmem>>, vector<1x32xf32>
    %212 = vector.shape_cast %211 : vector<1x32xf32> to vector<32xf32>
    %213 = vector.shape_cast %212 : vector<32xf32> to vector<1x32xf32>
    %214 = vector.broadcast %213 : vector<1x32xf32> to vector<8x32xf32>
    %215 = arith.addf %210, %214 : vector<8x32xf32>
    %216 = arith.addf %169, %215 : vector<8x32xf32>
    %c0_104 = arith.constant 0 : index
    %c0_105 = arith.constant 0 : index
    %c0_106 = arith.constant 0 : index
    %217 = vector.load %arg14[%c0_104, %c0_105, %c0_106] : memref<1x8x32xf32, #tpu.memory_space<vmem>>, vector<1x8x32xf32>
    %218 = vector.shape_cast %217 : vector<1x8x32xf32> to vector<8x32xf32>
    %219 = vector.shape_cast %216 : vector<8x32xf32> to vector<1x8x32xf32>
    tpu.vector_store %arg14[%c0_104, %c0_105, %c0_106], %219 {strides = array<i32>} : memref<1x8x32xf32, #tpu.memory_space<vmem>>, vector<1x8x32xf32>,
    return
  }
  func.func @transform_0(%arg0: i32, %arg1: i32) -> (i32, i32, i32) {
    %c0_i32 = arith.constant 0 : i32
    %c0_i32_0 = arith.constant 0 : i32
    return %arg0, %arg1, %c0_i32 : i32, i32, i32
  }
  func.func @transform_1(%arg0: i32, %arg1: i32) -> (i32, i32, i32, i32) {
    %c0_i32 = arith.constant 0 : i32
    %c0_i32_0 = arith.constant 0 : i32
    %c0_i32_1 = arith.constant 0 : i32
    return %arg0, %c0_i32, %arg1, %c0_i32_0 : i32, i32, i32, i32
  }
  func.func @transform_2(%arg0: i32, %arg1: i32) -> (i32, i32) {
    %c0_i32 = arith.constant 0 : i32
    %c0_i32_0 = arith.constant 0 : i32
    %c0_i32_1 = arith.constant 0 : i32
    return %c0_i32, %c0_i32_0 : i32, i32
  }
  func.func @transform_3(%arg0: i32, %arg1: i32) -> (i32, i32) {
    %c0_i32 = arith.constant 0 : i32
    %c0_i32_0 = arith.constant 0 : i32
    %c0_i32_1 = arith.constant 0 : i32
    return %c0_i32, %c0_i32_0 : i32, i32
  }
  func.func @transform_4(%arg0: i32, %arg1: i32) -> (i32, i32) {
    %c0_i32 = arith.constant 0 : i32
    %c0_i32_0 = arith.constant 0 : i32
    %c0_i32_1 = arith.constant 0 : i32
    return %c0_i32, %c0_i32_0 : i32, i32
  }
  func.func @transform_5(%arg0: i32, %arg1: i32) -> (i32, i32) {
    %c0_i32 = arith.constant 0 : i32
    %c0_i32_0 = arith.constant 0 : i32
    %c0_i32_1 = arith.constant 0 : i32
    return %c0_i32, %c0_i32_0 : i32, i32
  }
  func.func @transform_6(%arg0: i32, %arg1: i32) -> (i32, i32) {
    %c0_i32 = arith.constant 0 : i32
    %c0_i32_0 = arith.constant 0 : i32
    %c0_i32_1 = arith.constant 0 : i32
    return %c0_i32, %c0_i32_0 : i32, i32
  }
  func.func @transform_7(%arg0: i32, %arg1: i32) -> (i32, i32) {
    %c0_i32 = arith.constant 0 : i32
    %c0_i32_0 = arith.constant 0 : i32
    %c0_i32_1 = arith.constant 0 : i32
    return %c0_i32, %c0_i32_0 : i32, i32
  }
  func.func @transform_8(%arg0: i32, %arg1: i32) -> (i32, i32) {
    %c0_i32 = arith.constant 0 : i32
    %c0_i32_0 = arith.constant 0 : i32
    %c0_i32_1 = arith.constant 0 : i32
    return %c0_i32, %c0_i32_0 : i32, i32
  }
  func.func @transform_9(%arg0: i32, %arg1: i32) -> (i32, i32) {
    %c0_i32 = arith.constant 0 : i32
    %c0_i32_0 = arith.constant 0 : i32
    %c0_i32_1 = arith.constant 0 : i32
    return %c0_i32, %c0_i32_0 : i32, i32
  }
  func.func @transform_10(%arg0: i32, %arg1: i32) -> (i32, i32) {
    %c0_i32 = arith.constant 0 : i32
    %c0_i32_0 = arith.constant 0 : i32
    %c0_i32_1 = arith.constant 0 : i32
    return %c0_i32, %c0_i32_0 : i32, i32
  }
  func.func @transform_11(%arg0: i32, %arg1: i32) -> (i32, i32) {
    %c0_i32 = arith.constant 0 : i32
    %c0_i32_0 = arith.constant 0 : i32
    %c0_i32_1 = arith.constant 0 : i32
    return %c0_i32, %c0_i32_0 : i32, i32
  }
  func.func @transform_12(%arg0: i32, %arg1: i32) -> (i32, i32, i32) {
    %c0_i32 = arith.constant 0 : i32
    %c0_i32_0 = arith.constant 0 : i32
    return %arg0, %arg1, %c0_i32 : i32, i32, i32
  }
}

</mosaic_0001>

<bundles_post_ra>
// kernel: tpu_custom_call.1
= control target key start
LH: loop header
LB: loop body
LE: loop exit
PB: predicated region body
PF: predicated region fallthrough
CT: control target
= control target key end

     0   :  { %s2839_s0 = inlined_call_operand.vmem [shape: f32[2,8,32], index: 0, kind: input, shape index: {}]   ;;  %s2840_s1 = inlined_call_operand.vmem [shape: bf16[2,1,8,8], index: 1, kind: input, shape index: {}]   ;;  %s2841_s2 = inlined_call_operand.vmem [shape: f32[1,32], index: 2, kind: input, shape index: {}]   ;;  %s2842_s3 = inlined_call_operand.vmem [shape: f32[1,32], index: 3, kind: input, shape index: {}]   ;;  %s2843_s4 = inlined_call_operand.vmem [shape: bf16[32,96], index: 4, kind: input, shape index: {}]   ;;  %s2844_s5 = inlined_call_operand.vmem [shape: bf16[32,32], index: 5, kind: input, shape index: {}]   ;;  %s2845_s6 = inlined_call_operand.vmem [shape: f32[1,32], index: 6, kind: input, shape index: {}]   ;;  %s2846_s7 = inlined_call_operand.vmem [shape: f32[1,32], index: 7, kind: input, shape index: {}]   ;;  %s2847_s8 = inlined_call_operand.vmem [shape: bf16[32,128], index: 8, kind: input, shape index: {}]   ;;  %s2848_s9 = inlined_call_operand.vmem [shape: f32[1,128], index: 9, kind: input, shape index: {}]   ;;  %s2849_s10 = inlined_call_operand.vmem [shape: bf16[128,32], index: 10, kind: input, shape index: {}]   ;;  %s2850_s11 = inlined_call_operand.vmem [shape: f32[1,32], index: 11, kind: input, shape index: {}]   ;;  %s2851_s12 = inlined_call_operand.hbm [shape: f32[2,8,32], index: 12, kind: output, shape index: {}]  }
   0x1   :  { %2852 = sst [smem:[#allocation12_spill]] %s2839_s0 }
   0x2   :  { %2853 = sst [smem:[#allocation13_spill]] %s2840_s1 }
   0x3   :  { %2854 = sst [smem:[#allocation14_spill]] %s2841_s2 }
   0x4   :  { %17 = vsyncpa [#allocation10], 0 }
   0x5   :  { %19 = vsyncpa [#allocation10 + $0x1], 0  ;;  %s2541_s21 = smov 0   ;;  %s2543_s22 = smov 0  }
   0x6   :  { %s2545_s23 = smov 0   ;;  %s2547_s24 = smov 0  }
   0x7   :  { %s2549_s25 = smov 0   ;;  %s2551_s26 = smov 0  }
   0x8 LB: > { %s2071_s27 = sadd.s32 4294967295, %s2455_s26   ;;  %s2072_s28 = sadd.s32 4294967294, %s2455_s26   ;;  %s2455_s26 = sphi %s2551_s26, %s25_s26   ;;  %s2451_s25 = sphi %s2549_s25, %s2864_s25   ;;  %s2447_s24 = sphi %s2547_s24, %s2863_s24   ;;  %s2443_s23 = sphi %s2545_s23, %s2862_s23   ;;  %s2439_s22 = sphi %s2543_s22, %s2861_s22   ;;  %s2435_s21 = sphi %s2541_s21, %s2860_s21  }
   0x9   : > { %s37_s29 = sadd.s32 1, %s2451_s25  ;;  %s312_s30 = sadd.s32 1, %s2443_s23 }
   0xa   : > { %p39_p0 = scmp.ge.s32.totalorder %s37_s29, 2  ;;  %p322_p1 = scmp.ne.s32.totalorder %s2443_s23, %s2439_s22 }
   0xb   : > { %p323_p2 = scmp.eq.s32.totalorder %s2071_s27, 1  ;;  %p328_p3 = scmp.ne.s32.totalorder %s2439_s22, %s2435_s21 }
   0xc   : > { %s2866_s29 = smov (%p39_p0, %s37_s29), 0  ;;  %p329_p5 = scmp.eq.s32.totalorder %s2072_s28, 1 }
   0xd   : > { %p2581_p4 = por %p323_p2, %p322_p1  ;;  %s307_s14 = ssub.s32 %s2451_s25, %s2866_s29 }
   0xe   : > { %p2075_p6 = scmp.ge.s32.totalorder %s2455_s26, 1  ;;  %p310_p7 = scmp.eq.s32.totalorder %s307_s14, 0 }
   0xf   : > { %p2588_p8 = por %p329_p5, %p328_p3  ;;  %p397_p9 = scmp.lt.s32.totalorder %s2455_s26, 3 }
  0x10   : > { %s2594_s16 = scalar_select %p310_p7, %s2443_s23, %s312_s30  }
  0x11   : > { %p398_p10 = pnand %p2075_p6, %p397_p9 }
  0x12   : > { %p448_p11 = scmp.lt.s32.totalorder (!%p398_p10), %s2447_s24, 1  ;;  %vm467_vm0 = vcmask (!%p398_p10), 261120   ;;  %s2857_s0 = sld [smem:[#allocation12_spill]] (!%p398_p10)  ;;  %v2343_v7 = vld [vmem:[%s2843_s4] sm:$0xff] (!%p398_p10)   ;;  %v2457_v8 = vmov (!%p398_p10), 0.0   ;;  %vm2458_vm1 = vmmov (!%p398_p10), 0   ;;  %v639_v49 = vlaneseq (!%p398_p10) }
  0x13   : > { %401 = sbr.rel (%p398_p10) target bundleno = 2473 (0x9a9), region = 68  ;;  %2176 = vmatprep.subr.bf16.mxu0 (!%p398_p10), %v2457_v8  ;;  %2180 = vmatprep.mubr.msk.bf16.mxu0 (!%p398_p10), %vm2458_vm1, %v2457_v8  ;;  %v2344_v9 = vld [vmem:[%s2843_s4 + $0x8] sm:$0xff] (!%p398_p10)   ;;  %s2858_s2 = sld [smem:[#allocation14_spill]] (!%p398_p10)  ;;  %v2080_v16 = vld [vmem:[%s2842_s3] ss:$0 sm:$0xff] (!%p398_p10)  ;;  %vm558_vm2 = vcmask (!%p398_p10), 60416  }
  0x14   : > { %2177 = vmatpush3.bf16.msra.mxu0 (!%p398_p10), %v2343_v7  ;;  %2196 = vmatprep.subr.bf16.mxu1 (!%p398_p10), %v2457_v8  ;;  %s2459_s30 = smov (!%p398_p10), 80   ;;  %s2460_s14 = smov (!%p398_p10), 96   ;;  %vm658_vm3 = vcmask (!%p398_p10), 64512   ;;  %vm895_vm4 = vcmask (!%p398_p10), 1043456   ;;  %v640_v50 = vshrl.u32 (!%p398_p10), %v639_v49, 7  ;;  %v642_v51 = vand.u32 (!%p398_p10), 127, %v639_v49 }
  0x15   : > { %2178 = vmatprep.subr.bf16.mxu0 (!%p398_p10), %v2457_v8  ;;  %2198 = vmatprep.mubr.msk.bf16.mxu1 (!%p398_p10), %vm2458_vm1, %v2457_v8  ;;  %s2462_s19 = smov (!%p398_p10), 72   ;;  %s2463_s20 = smov (!%p398_p10), 120   ;;  %v2467_v54 = vmov (!%p398_p10), -1e+30   ;;  %vm867_vm6 = vcmask (!%p398_p10), 7168   ;;  %vm1643_vm7 = vcmask (!%p398_p10), 126016  }
  0x16   : > { %s2465_s28 = smov (!%p398_p10), 104   ;;  %s2859_s1 = sld [smem:[#allocation13_spill]] (!%p398_p10)  ;;  %vm643_vm5 = vcmp.le.s32.totalorder (!%p398_p10), %v642_v51, %v640_v50  ;;  %vm1652_vm8 = vcmask (!%p398_p10), 191616   ;;  %vm1661_vm9 = vcmask (!%p398_p10), 257216  }
  0x17   : > { %v644_v55 = vsel (!%p398_p10), %vm643_vm5, 0.0, %v2467_v54 }
  0x18   : > { %2179 = vmatpush3.bf16.msra.mxu0 (!%p398_p10), %v2344_v9 }
  0x19   : > { %2184 = vmatprep.subr.bf16.mxu0 (!%p398_p10), %v2457_v8  ;;  %v2079_v14 = vld [vmem:[%s2858_s2] ss:$0 sm:$0xff] (!%p398_p10) }
  0x1a   : > { %s2598_s17 = scalar_select %p448_p11, %s2447_s24, 1 }
  0x1c   : > { %s2077_s18 = sshll.u32 %s2598_s17, 3 }
  0x1d   : > { %s454_s27 = scalar_lea.vmem %s2857_s0, %s2077_s18  ;;  %s2461_s18 = smov 88  }
  0x1e   : > { %v2604_v0 = vld [vmem:[%s454_s27] sm:$0xff]  ;;  %s2464_s27 = smov 112   ;;  %s2466_s0 = smov 64  }
  0x1f   : > { %v468_v1 = vsel %vm467_vm0, %v2604_v0, 0.0 }
  0x20   : > { %469 = vadd.xlane.f32.xlu0 %v468_v1 }
  0xad   : > { %v470_v2 = vpop.xlane.xlu0 %469 }
  0xae   : > { %v472_v3 = vmul.f32 0.03125, %v470_v2 }
  0xb0   : > { %v473_v4 = vsub.f32 %v2604_v0, %v472_v3 }
  0xb2   : > { %v474_v5 = vmul.f32 %v473_v4, %v473_v4 }
  0xb4   : > { %v475_v6 = vsel %vm467_vm0, %v474_v5, 0.0 }
  0xb5   : > { %476 = vadd.xlane.f32.xlu0 %v475_v6 }
 0x142   : > { %v477_v10 = vpop.xlane.xlu0 %476 }
 0x143   : > { %v478_v11 = vmul.f32 0.03125, %v477_v10 }
 0x145   : > { %v479_v12 = vadd.f32 1e-05, %v478_v11 }
 0x147   : > { %2357 = vrsqrt.f32 %v479_v12 }
 0x151   : > { %v2358_v13 = vpop.eup %2357 }
 0x152   : > { %v481_v15 = vmul.f32 %v2358_v13, %v473_v4 }
 0x154   : > { %v488_v17 = vmul.f32 %v2079_v14, %v481_v15 }
 0x156   : > { %v495_v18 = vadd.f32 %v2080_v16, %v488_v17 }
 0x158   : > { %v496_v19 = vpack.c.bf16 %v495_v18, %v495_v18 }
 0x15a   : > { %2181 = vmatmul.mubr.msk.bf16.vlgmr.msra.gmra.mrb[0].mxu0 %vm467_vm0, %v496_v19 }
 0x15b   : > { %2186 = vmatprep.mubr.msk.bf16.mxu0 %vm2458_vm1, %v2457_v8 }
 0x22d   : > { %v550_v20 = vpop.f32.mrb[0].mxu0 }
 0x22e   : > { %v556_v21 = vmul.f32 0.35355338, %v550_v20  ;;  %v2633_v22 = vpack.c.bf16 %v550_v20, %v550_v20  ;;  %v2182_v23 = vpop.f32.mrb[1].mxu0 }
 0x22f   : > { %v553_v24 = vpop.f32.mrb[2].mxu0 }
 0x230   : > { %v557_v25 = vpack.c.bf16 %v556_v21, %v556_v21  ;;  %604 = vrot.lane.b32.xlu0 %v2633_v22, %s2459_s30  ;;  %564 = vrot.lane.b32.xlu1 %v2633_v22, %s2460_s14  ;;  %v2183_v26 = vpop.f32.mrb[3].mxu0  ;;  %s2472_s14 = smov 16  }
 0x232   : > { %559 = vst.msk [vmem:[#allocation2] sm:$0xf] %vm558_vm2, %v557_v25 }
 0x234   : > { %586 = vrot.lane.b32.xlu1 %v2633_v22, %s2461_s18 }
 0x238   : > { %622 = vrot.lane.b32.xlu1 %v2633_v22, %s2462_s19  ;;  %s2469_s19 = smov 40  }
 0x239   : > { %v635_v38 = vld [vmem:[#allocation2] sm:$0xf] }
 0x23c   : > { %581 = vrot.lane.b32.xlu1 %v557_v25, %s2463_s20  ;;  %s2470_s20 = smov 56  }
 0x240   : > { %599 = vrot.lane.b32.xlu1 %v557_v25, %s2464_s27 }
 0x244   : > { %617 = vrot.lane.b32.xlu1 %v557_v25, %s2465_s28  ;;  %s2134_s28 = sshll.u32 %s2447_s24, 7 }
 0x248   : > { %572 = vrot.lane.b32.xlu1 %v2633_v22, %s2466_s0  ;;  %s2078_s0 = sshll.u32 %s2598_s17, 2  ;;  %s2468_s17 = smov 48  }
 0x249   : > { %s461_s18 = scalar_lea.vmem %s2859_s1, %s2078_s0  ;;  %s2791_s1 = scalar_lea.hbm %s2851_s12, %s2134_s28 }
 0x24a   : > { %v647_v52 = vld [vmem:[%s461_s18] sm:$0xf]  ;;  %s2473_s18 = smov 8  }
 0x24b   : > { %v648_v53 = vunpack.c.l.bf16 %v647_v52  ;;  %v2471_v52 = vmov 0  }
 0x24c   : > { %2342 = vset.pattern.permute.xlu1 %v2471_v52  ;;  %2341 = vset.pattern.permute.xlu0 %v2471_v52  ;;  %v2348_v52 = vld [vmem:[%s2847_s8 + $0x8] sm:$0xff]  }
 0x24d   : > { %v649_v56 = vadd.f32 %v648_v53, %v644_v55 }
 0x2a2   : > { %v605_v27 = vpop.permute.xlu0 %604  ;;  %v565_v28 = vpop.permute.xlu1 %564 }
 0x2a3   : > { %2088 = vst.msk [vmem:[#allocation3 + $0x8] sm:$0xf] %vm558_vm2, %v605_v27  ;;  %571 = vst.msk [vmem:[#allocation3] sm:$0xf] %vm558_vm2, %v565_v28 }
 0x2a6   : > { %v587_v29 = vpop.permute.xlu1 %586 }
 0x2a7   : > { %2086 = vst.msk [vmem:[#allocation3 + $0x4] sm:$0xf] %vm558_vm2, %v587_v29 }
 0x2aa   : > { %v623_v30 = vpop.permute.xlu1 %622  ;;  %v650_v31 = vld [vmem:[#allocation3] sm:$0xf]  ;;  %v652_v32 = vld [vmem:[#allocation3 + $0x8] sm:$0xf] }
 0x2ab   : > { %2090 = vst.msk [vmem:[#allocation3 + $0xc] sm:$0xf] %vm558_vm2, %v623_v30  ;;  %v663_v33 = vsel %vm658_vm3, %v650_v31, 0  ;;  %v755_v34 = vsel %vm658_vm3, %v652_v32, 0 }
 0x2ac   : > { %2185 = vmatpush3.bf16.xpose.msra.mxu0 %v663_v33  ;;  %2197 = vmatpush3.bf16.xpose.msra.mxu1 %v755_v34 }
 0x2ad   : > { %2190 = vmatprep.subr.bf16.mxu0 %v2457_v8  ;;  %2208 = vmatprep.subr.bf16.mxu1 %v2457_v8 }
 0x2ae   : > { %v582_v35 = vpop.permute.xlu1 %581  ;;  %v651_v36 = vld [vmem:[#allocation3 + $0x4] sm:$0xf] }
 0x2af   : > { %585 = vst.msk [vmem:[#allocation2 + $0x4] sm:$0xf] %vm558_vm2, %v582_v35  ;;  %v709_v39 = vsel %vm658_vm3, %v651_v36, 0 }
 0x2b2   : > { %v600_v37 = vpop.permute.xlu1 %599  ;;  %v653_v41 = vld [vmem:[#allocation3 + $0xc] sm:$0xf] }
 0x2b3   : > { %603 = vst.msk [vmem:[#allocation2 + $0x8] sm:$0xf] %vm558_vm2, %v600_v37  ;;  %2187 = vmatmul.mubr.msk.bf16.vlgmr.msra.gmra.mrb[4].mxu0 %vm658_vm3, %v635_v38  ;;  %v801_v45 = vsel %vm658_vm3, %v653_v41, 0 }
 0x2b4   : > { %2191 = vmatpush3.bf16.xpose.msra.mxu0 %v709_v39  ;;  %2192 = vmatprep.mubr.msk.bf16.mxu0 %vm2458_vm1, %v2457_v8 }
 0x2b5   : > { %2202 = vmatprep.subr.bf16.mxu0 %v2457_v8 }
 0x2b6   : > { %v618_v40 = vpop.permute.xlu1 %617  ;;  %v636_v43 = vld [vmem:[#allocation2 + $0x4] sm:$0xf] }
 0x2b7   : > { %621 = vst.msk [vmem:[#allocation2 + $0xc] sm:$0xf] %vm558_vm2, %v618_v40 }
 0x2ba   : > { %v573_v42 = vpop.permute.xlu1 %572  ;;  %v637_v44 = vld [vmem:[#allocation2 + $0x8] sm:$0xf] }
 0x2bb   : > { %577 = vst.msk [vmem:[#allocation4] sm:$0xf] %vm558_vm2, %v573_v42  ;;  %2193 = vmatmul.mubr.msk.bf16.vlgmr.msra.gmra.mrb[8].mxu0 %vm658_vm3, %v636_v43  ;;  %2199 = vmatmul.mubr.msk.bf16.vlgmr.msra.gmra.mrb[0].mxu1 %vm658_vm3, %v637_v44 }
 0x2bc   : > { %2203 = vmatpush3.bf16.xpose.msra.mxu0 %v801_v45  ;;  %2204 = vmatprep.mubr.msk.bf16.mxu0 %vm2458_vm1, %v2457_v8 }
 0x2bd   : > { %2210 = vmatprep.mubr.msk.bf16.mxu1 %vm2458_vm1, %v2457_v8  ;;  %2214 = vmatprep.subr.bf16.mxu0 %v2457_v8 }
 0x2be   : > { %v638_v46 = vld [vmem:[#allocation2 + $0xc] sm:$0xf] }
 0x2c2   : > { %v654_v47 = vld [vmem:[#allocation4] sm:$0xf] }
 0x2c3   : > { %2205 = vmatmul.mubr.msk.bf16.vlgmr.msra.gmra.mrb[12].mxu0 %vm658_vm3, %v638_v46  ;;  %v897_v48 = vsel %vm895_vm4, %v654_v47, 0 }
 0x2c4   : > { %2209 = vmatpush3.bf16.msra.mxu1 %v897_v48  ;;  %2216 = vmatprep.mubr.msk.bf16.mxu0 %vm2458_vm1, %v2457_v8 }
 0x2c5   : > { %2220 = vmatprep.subr.bf16.mxu1 %v2457_v8 }
 0x386   : > { %v699_v57 = vpop.f32.mrb[4].mxu0 }
 0x387   : > { %v700_v58 = vadd.f32 %v699_v57, %v649_v56  ;;  %v2188_v59 = vpop.f32.mrb[5].mxu0 }
 0x388   : > { %v702_v60 = vpop.f32.mrb[6].mxu0 }
 0x389   : > { %v2189_v61 = vpop.f32.mrb[7].mxu0  ;;  %v843_v62 = vsel %vm658_vm3, %v700_v58, -inf }
 0x38a   : > { %844 = vmax.xlane.f32.xlu1 %v843_v62 }
 0x38e   : > { %v745_v63 = vpop.f32.mrb[8].mxu0  ;;  %v791_v1 = vpop.f32.mrb[0].mxu1 }
 0x38f   : > { %v746_v2 = vadd.f32 %v745_v63, %v649_v56  ;;  %v792_v3 = vadd.f32 %v791_v1, %v649_v56  ;;  %v2194_v4 = vpop.f32.mrb[9].mxu0  ;;  %v2200_v5 = vpop.f32.mrb[1].mxu1 }
 0x390   : > { %v748_v6 = vpop.f32.mrb[10].mxu0  ;;  %v794_v7 = vpop.f32.mrb[2].mxu1 }
 0x391   : > { %v2195_v9 = vpop.f32.mrb[11].mxu0  ;;  %v2201_v10 = vpop.f32.mrb[3].mxu1  ;;  %v849_v11 = vsel %vm658_vm3, %v792_v3, -inf  ;;  %v846_v12 = vsel %vm658_vm3, %v746_v2, -inf }
 0x392   : > { %850 = vmax.xlane.f32.xlu1 %v849_v11  ;;  %847 = vmax.xlane.f32.xlu0 %v846_v12 }
 0x396   : > { %v837_v13 = vpop.f32.mrb[12].mxu0 }
 0x397   : > { %v838_v14 = vadd.f32 %v837_v13, %v649_v56  ;;  %v2206_v15 = vpop.f32.mrb[13].mxu0 }
 0x398   : > { %v840_v16 = vpop.f32.mrb[14].mxu0 }
 0x399   : > { %v2207_v17 = vpop.f32.mrb[15].mxu0  ;;  %v852_v18 = vsel %vm658_vm3, %v838_v14, -inf }
 0x39a   : > { %853 = vmax.xlane.f32.xlu0 %v852_v18 }
 0x3a3   : > { %611 = vrot.lane.b32.xlu1 %v2633_v22, %s2468_s17  ;;  %s2474_s17 = smov 24  }
 0x3a7   : > { %629 = vrot.lane.b32.xlu1 %v2633_v22, %s2469_s19 }
 0x3b0   : > { %593 = vrot.lane.b32.xlu0 %v2633_v22, %s2470_s20  ;;  %s2475_s20 = smov [#allocation9]  }
 0x3b1   : > { %s2381_s27 = sshll.u32 %s2475_s20, 4  ;;  %s2382_s27 = int_to_ptr.vmem [resolvable:$false] %s2381_s27 }
 0x3b2   : > { %s2383_s2 = scalar_lea.vmem %s2382_s27, 256 }
 0x417   : > { %v845_v19 = vpop.xlane.xlu1 %844 }
 0x418   : > { %v855_v20 = vsub.f32 %v700_v58, %v845_v19 }
 0x41a   : > { %v859_v21 = vmul.f32 1.442695, %v855_v20 }
 0x41c   : > { %2359 = vpow2.f32 %v859_v21  ;;  %v2345_v21 = vld [vmem:[%s2844_s5] sm:$0xff]  }
 0x41f   : > { %v851_v23 = vpop.xlane.xlu1 %850  ;;  %v848_v24 = vpop.xlane.xlu0 %847 }
 0x420   : > { %v857_v25 = vsub.f32 %v792_v3, %v851_v23  ;;  %v856_v26 = vsub.f32 %v746_v2, %v848_v24 }
 0x422   : > { %v863_v27 = vmul.f32 1.442695, %v857_v25  ;;  %v861_v28 = vmul.f32 1.442695, %v856_v26  ;;  %v2346_v26 = vld [vmem:[%s2844_s5 + $0x8] sm:$0xff]  }
 0x423   : > { %v612_v29 = vpop.permute.xlu1 %611 }
 0x424   : > { %2361 = vpow2.f32 %v863_v27  ;;  %2089 = vst.msk [vmem:[#allocation4 + $0x8] sm:$0xf] %vm558_vm2, %v612_v29 }
 0x425   : > { %2363 = vpow2.f32 %v861_v28 }
 0x426   : > { %v2360_v30 = vpop.eup %2359 }
 0x427   : > { %v630_v31 = vpop.permute.xlu1 %629  ;;  %v854_v32 = vpop.xlane.xlu0 %853  ;;  %v888_v22 = vpack.c.bf16 %v2360_v30, %v2360_v30  ;;  %v872_v50 = vsel %vm658_vm3, %v2360_v30, 0.0 }
 0x428   : > { %2091 = vst.msk [vmem:[#allocation4 + $0xc] sm:$0xf] %vm558_vm2, %v630_v31  ;;  %v858_v33 = vsub.f32 %v838_v14, %v854_v32 }
 0x429   : > { %2211 = vmatmul.mubr.msk.bf16.vlgmr.msra.gmra.mrb[4].mxu1 %vm658_vm3, %v888_v22 }
 0x42a   : > { %v865_v34 = vmul.f32 1.442695, %v858_v33  ;;  %2222 = vmatprep.mubr.msk.bf16.mxu1 %vm2458_vm1, %v2457_v8 }
 0x42b   : > { %v594_v35 = vpop.permute.xlu0 %593  ;;  %v656_v36 = vld [vmem:[#allocation4 + $0x8] sm:$0xf] }
 0x42c   : > { %2365 = vpow2.f32 %v865_v34  ;;  %2087 = vst.msk [vmem:[#allocation4 + $0x4] sm:$0xf] %vm558_vm2, %v594_v35  ;;  %v989_v37 = vsel %vm895_vm4, %v656_v36, 0 }
 0x42d   : > { %2221 = vmatpush3.bf16.msra.mxu1 %v989_v37 }
 0x42e   : > { %v2362_v38 = vpop.eup %2361  ;;  %2232 = vmatprep.subr.bf16.mxu1 %v2457_v8 }
 0x42f   : > { %v2364_v39 = vpop.eup %2363  ;;  %v878_v40 = vsel %vm658_vm3, %v2362_v38, 0.0  ;;  %v890_v41 = vpack.c.bf16 %v2362_v38, %v2362_v38  ;;  %v657_v45 = vld [vmem:[#allocation4 + $0xc] sm:$0xf] }
 0x430   : > { %879 = vadd.xlane.f32.xlu1 %v878_v40  ;;  %v875_v42 = vsel %vm658_vm3, %v2364_v39, 0.0  ;;  %v889_v47 = vpack.c.bf16 %v2364_v39, %v2364_v39  ;;  %v1035_v49 = vsel %vm895_vm4, %v657_v45, 0 }
 0x431   : > { %876 = vadd.xlane.f32.xlu0 %v875_v42  ;;  %2223 = vmatmul.mubr.msk.bf16.vlgmr.msra.gmra.mrb[8].mxu1 %vm658_vm3, %v890_v41 }
 0x432   : > { %2236 = vmatprep.mubr.msk.bf16.mxu1 %vm2458_vm1, %v2457_v8  ;;  %2233 = vmatpush3.bf16.msra.mxu1 %v2345_v21 }
 0x433   : > { %v655_v43 = vld [vmem:[#allocation4 + $0x4] sm:$0xf]  ;;  %2234 = vmatprep.subr.bf16.mxu1 %v2457_v8 }
 0x434   : > { %v943_v44 = vsel %vm895_vm4, %v655_v43, 0 }
 0x435   : > { %2215 = vmatpush3.bf16.msra.mxu0 %v943_v44 }
 0x436   : > { %v2366_v46 = vpop.eup %2365  ;;  %2226 = vmatprep.subr.bf16.mxu0 %v2457_v8  ;;  %2235 = vmatpush3.bf16.msra.mxu1 %v2346_v26 }
 0x437   : > { %v881_v48 = vsel %vm658_vm3, %v2366_v46, 0.0  ;;  %v891_v51 = vpack.c.bf16 %v2366_v46, %v2366_v46  ;;  %2248 = vmatprep.subr.bf16.mxu1 %v2457_v8 }
 0x438   : > { %882 = vadd.xlane.f32.xlu0 %v881_v48  ;;  %2217 = vmatmul.mubr.msk.bf16.vlgmr.msra.gmra.mrb[16].mxu0 %vm658_vm3, %v889_v47 }
 0x439   : > { %2227 = vmatpush3.bf16.msra.mxu0 %v1035_v49  ;;  %2228 = vmatprep.mubr.msk.bf16.mxu0 %vm2458_vm1, %v2457_v8 }
 0x43a   : > { %2240 = vmatprep.subr.bf16.mxu0 %v2457_v8 }
 0x43c   : > { %873 = vadd.xlane.f32.xlu0 %v872_v50 }
 0x440   : > { %2229 = vmatmul.mubr.msk.bf16.vlgmr.msra.gmra.mrb[20].mxu0 %vm658_vm3, %v891_v51 }
 0x441   : > { %2244 = vmatprep.mubr.msk.bf16.mxu0 %vm2458_vm1, %v2457_v8 }
 0x4bd   : > { %v880_v53 = vpop.xlane.xlu1 %879 }
 0x4be   : > { %886 = vst.msk [vmem:[#allocation7 + $0x10] sm:$0xff] %vm867_vm6, %v880_v53  ;;  %v877_v54 = vpop.xlane.xlu0 %876  ;;  %v2349_v53 = vld [vmem:[%s2849_s10] sm:$0xff]  }
 0x4bf   : > { %885 = vst.msk [vmem:[#allocation7 + $0x8] sm:$0xff] %vm867_vm6, %v877_v54  ;;  %v2350_v54 = vld [vmem:[%s2849_s10 + $0x8] sm:$0xff]  }
 0x4c5   : > { %v883_v55 = vpop.xlane.xlu0 %882  ;;  %v1604_v56 = vld [vmem:[#allocation7 + $0x10] sm:$0xff] }
 0x4c6   : > { %887 = vst.msk [vmem:[#allocation7 + $0x18] sm:$0xff] %vm867_vm6, %v883_v55  ;;  %2367 = vrcp.f32 %v1604_v56  ;;  %v1603_v57 = vld [vmem:[#allocation7 + $0x8] sm:$0xff]  ;;  %v2351_v55 = vld [vmem:[%s2849_s10 + $0x10] sm:$0xff]  }
 0x4c7   : > { %2369 = vrcp.f32 %v1603_v57  ;;  %v2352_v56 = vld [vmem:[%s2849_s10 + $0x18] sm:$0xff]   ;;  %v2353_v57 = vld [vmem:[%s2849_s10 + $0x20] sm:$0xff]  }
 0x4c9   : > { %v874_v58 = vpop.xlane.xlu0 %873 }
 0x4ca   : > { %884 = vst.msk [vmem:[#allocation7] sm:$0xff] %vm867_vm6, %v874_v58  ;;  %v2354_v58 = vld [vmem:[%s2849_s10 + $0x28] sm:$0xff]  }
 0x4cd   : > { %v1605_v59 = vld [vmem:[#allocation7 + $0x18] sm:$0xff] }
 0x4ce   : > { %2371 = vrcp.f32 %v1605_v59 }
 0x4d0   : > { %v2368_v60 = vpop.eup %2367 }
 0x4d1   : > { %v2370_v61 = vpop.eup %2369  ;;  %1622 = vperm.xlu0 %2341, %v2368_v60   ;;  %v1602_v62 = vld [vmem:[#allocation7] sm:$0xff] }
 0x4d2   : > { %1617 = vperm.xlu1 %2342, %v2370_v61   ;;  %2373 = vrcp.f32 %v1602_v62 }
 0x4d8   : > { %v2372_v63 = vpop.eup %2371 }
 0x4d9   : > { %1627 = vperm.xlu1 %2342, %v2372_v63   ;;  %v2118_v63 = vld [vmem:[%s2845_s6] ss:$0 sm:$0xff] }
 0x4dc   : > { %v2374_v1 = vpop.eup %2373 }
 0x4dd   : > { %1612 = vperm.xlu1 %2342, %v2374_v1  }
 0x4fc   : > { %v933_v2 = vpop.f32.mrb[4].mxu1 }
 0x4fd   : > { %1077 = vst.msk [vmem:[#allocation8] sm:$0xff] %vm658_vm3, %v933_v2  ;;  %v2212_v3 = vpop.f32.mrb[5].mxu1  ;;  %v2119_v2 = vld [vmem:[%s2846_s7] ss:$0 sm:$0xff] }
 0x4fe   : > { %v936_v4 = vpop.f32.mrb[6].mxu1 }
 0x4ff   : > { %v2213_v5 = vpop.f32.mrb[7].mxu1 }
 0x504   : > { %v1025_v6 = vpop.f32.mrb[8].mxu1  ;;  %v1598_v33 = vld [vmem:[#allocation8] sm:$0xff] }
 0x505   : > { %1079 = vst.msk [vmem:[#allocation8 + $0x10] sm:$0xff] %vm658_vm3, %v1025_v6  ;;  %v2224_v7 = vpop.f32.mrb[9].mxu1  ;;  %v2355_v6 = vld [vmem:[%s2849_s10 + $0x30] sm:$0xff]  }
 0x506   : > { %v1028_v9 = vpop.f32.mrb[10].mxu1  ;;  %v2356_v7 = vld [vmem:[%s2849_s10 + $0x38] sm:$0xff]  }
 0x507   : > { %v2225_v10 = vpop.f32.mrb[11].mxu1  ;;  %v2120_v9 = vld [vmem:[%s2848_s9] ss:$0 sm:$0xff] }
 0x50b   : > { %v979_v11 = vpop.f32.mrb[16].mxu0 }
 0x50c   : > { %1078 = vst.msk [vmem:[#allocation8 + $0x8] sm:$0xff] %vm658_vm3, %v979_v11  ;;  %v2218_v12 = vpop.f32.mrb[17].mxu0  ;;  %v1600_v19 = vld [vmem:[#allocation8 + $0x10] sm:$0xff] }
 0x50d   : > { %v982_v13 = vpop.f32.mrb[18].mxu0 }
 0x50e   : > { %v2219_v14 = vpop.f32.mrb[19].mxu0 }
 0x513   : > { %v1071_v15 = vpop.f32.mrb[20].mxu0  ;;  %v1599_v25 = vld [vmem:[#allocation8 + $0x8] sm:$0xff] }
 0x514   : > { %1080 = vst.msk [vmem:[#allocation8 + $0x18] sm:$0xff] %vm658_vm3, %v1071_v15  ;;  %v2230_v16 = vpop.f32.mrb[21].mxu0 }
 0x515   : > { %v1074_v17 = vpop.f32.mrb[22].mxu0 }
 0x516   : > { %v2231_v18 = vpop.f32.mrb[23].mxu0 }
 0x51b   : > { %v1601_v31 = vld [vmem:[#allocation8 + $0x18] sm:$0xff] }
 0x550   : > { %v1623_v20 = vpop.permute.xlu0 %1622 }
 0x551   : > { %v1618_v23 = vpop.permute.xlu1 %1617  ;;  %v1632_v24 = vmul.f32 %v1623_v20, %v1600_v19 }
 0x552   : > { %v1631_v27 = vmul.f32 %v1618_v23, %v1599_v25 }
 0x553   : > { %v2140_v28 = vpack.c.bf16 %v1632_v24, %v1632_v24 }
 0x554   : > { %v2139_v29 = vpack.c.bf16 %v1631_v27, %v1631_v27 }
 0x555   : > { %1649 = vrot.lane.b32.xlu1 %v2140_v28, %s2472_s14 }
 0x558   : > { %v1628_v30 = vpop.permute.xlu1 %1627 }
 0x559   : > { %v1633_v32 = vmul.f32 %v1628_v30, %v1601_v31  ;;  %1640 = vrot.lane.b32.xlu1 %v2139_v29, %s2473_s18 }
 0x55b   : > { %v2141_v22 = vpack.c.bf16 %v1633_v32, %v1633_v32 }
 0x55c   : > { %v1613_v34 = vpop.permute.xlu1 %1612 }
 0x55d   : > { %v1630_v35 = vmul.f32 %v1613_v34, %v1598_v33  ;;  %1658 = vrot.lane.b32.xlu1 %v2141_v22, %s2474_s17  ;;  %s445_s17 = sand.u32 1, %s2439_s22  }
 0x55e   : > { %s2076_s19 = sshll.u32 %s445_s17, 3  ;;  %s1936_s24 = scalar_lea.sflag [#allocation10], %s445_s17 }
 0x55f   : > { %v1634_v36 = vpack.c.bf16 %v1630_v35, %v1630_v35  ;;  %s447_s0 = scalar_lea.vmem [#allocation9], %s2076_s19 }
 0x560   : > { %s1950_s30 = sshll.u32 %s447_s0, 4  ;;  %s2793_s30 = int_to_ptr.vmem [resolvable:$true] %s1950_s30 }
 0x561   : > { %1635 = vst.msk [vmem:[#allocation5] sm:$0xf] %vm558_vm2, %v1634_v36  ;;  %s2377_s19 = scalar_lea.vmem %s2793_s30, 128  ;;  %p2384_p1 = scmp.lt.s32.totalorder %s2793_s30, %s2382_s27 }
 0x562   : > { %p2378_p12 = scmp.ne.s32.totalorder %s2793_s30, %s2377_s19  ;;  %p2385_p2 = scmp.lt.s32.totalorder %s2383_s2, %s2377_s19 }
 0x564   : > { %p2379_p13 = pnand %p2378_p12, %p2581_p4  ;;  %p2386_p3 = por %p2385_p2, %p2384_p1 }
 0x566   : > { %p2380_p0 = pneg %p2379_p13 }
 0x568   : > { %p2387_p5 = pnand %p2386_p3, %p2380_p0 }
 0x5c7   : > { %v1650_v37 = vpop.permute.xlu1 %1649 }
 0x5cb   : > { %v1641_v38 = vpop.permute.xlu1 %1640 }
 0x5cc   : > { %1644 = vst.msk [vmem:[#allocation5] sm:$0xf] %vm1643_vm7, %v1641_v38 }
 0x5cd   : > { %1653 = vst.msk [vmem:[#allocation5] sm:$0xf] %vm1652_vm8, %v1650_v37 }
 0x5cf   : > { %v1659_v39 = vpop.permute.xlu1 %1658 }
 0x5d0   : > { %1662 = vst.msk [vmem:[#allocation5] sm:$0xf] %vm1661_vm9, %v1659_v39 }
 0x5d7   : > { %v1663_v40 = vld [vmem:[#allocation5] sm:$0xf] }
 0x5d8   : > { %2237 = vmatmul.mubr.msk.bf16.vlgmr.msra.gmra.mrb[12].mxu1 %vm467_vm0, %v1663_v40 }
 0x5d9   : > { %2264 = vmatprep.mubr.msk.bf16.mxu1 %vm2458_vm1, %v2457_v8  ;;  %2249 = vmatpush3.bf16.msra.mxu1 %v2349_v53 }
 0x5da   : > { %2250 = vmatprep.subr.bf16.mxu1 %v2457_v8 }
 0x5dd   : > { %2251 = vmatpush3.bf16.msra.mxu1 %v2350_v54 }
 0x5de   : > { %2252 = vmatprep.subr.bf16.mxu1 %v2457_v8 }
 0x5e1   : > { %2253 = vmatpush3.bf16.msra.mxu1 %v2351_v55 }
 0x5e2   : > { %2254 = vmatprep.subr.bf16.mxu1 %v2457_v8 }
 0x5e5   : > { %2255 = vmatpush3.bf16.msra.mxu1 %v2352_v56 }
 0x5e6   : > { %2256 = vmatprep.subr.bf16.mxu1 %v2457_v8 }
 0x5e9   : > { %2257 = vmatpush3.bf16.msra.mxu1 %v2353_v57 }
 0x5ea   : > { %2258 = vmatprep.subr.bf16.mxu1 %v2457_v8 }
 0x5ed   : > { %2259 = vmatpush3.bf16.msra.mxu1 %v2354_v58 }
 0x5ee   : > { %2260 = vmatprep.subr.bf16.mxu1 %v2457_v8 }
 0x5f1   : > { %2261 = vmatpush3.bf16.msra.mxu1 %v2355_v6 }
 0x5f2   : > { %2262 = vmatprep.subr.bf16.mxu1 %v2457_v8 }
 0x5f5   : > { %2263 = vmatpush3.bf16.msra.mxu1 %v2356_v7 }
 0x6ab   : > { %v1717_v41 = vpop.f32.mrb[12].mxu1 }
 0x6ac   : > { %v2728_v42 = vadd.f32 %v1717_v41, %v2604_v0  ;;  %v2238_v43 = vpop.f32.mrb[13].mxu1  ;;  %v2347_v0 = vld [vmem:[%s2847_s8] sm:$0xff]  }
 0x6ad   : > { %v1720_v44 = vpop.f32.mrb[14].mxu1  ;;  %2241 = vmatpush3.bf16.msra.mxu0 %v2347_v0 }
 0x6ae   : > { %v2239_v45 = vpop.f32.mrb[15].mxu1  ;;  %v1726_v46 = vsel %vm467_vm0, %v2728_v42, 0.0  ;;  %2242 = vmatprep.subr.bf16.mxu0 %v2457_v8  ;;  %v2124_v8 = vld [vmem:[%s2850_s11] ss:$0 sm:$0xff] }
 0x6af   : > { %1727 = vadd.xlane.f32.xlu1 %v1726_v46 }
 0x6b1   : > { %2243 = vmatpush3.bf16.msra.mxu0 %v2348_v52 }
 0x73c   : > { %v1728_v47 = vpop.xlane.xlu1 %1727 }
 0x73d   : > { %v1729_v48 = vmul.f32 0.03125, %v1728_v47 }
 0x73f   : > { %v1730_v49 = vsub.f32 %v2728_v42, %v1729_v48 }
 0x741   : > { %v1731_v50 = vmul.f32 %v1730_v49, %v1730_v49 }
 0x743   : > { %v1732_v51 = vsel %vm467_vm0, %v1731_v50, 0.0 }
 0x744   : > { %1733 = vadd.xlane.f32.xlu0 %v1732_v51 }
 0x7d1   : > { %v1734_v59 = vpop.xlane.xlu0 %1733 }
 0x7d2   : > { %v1735_v60 = vmul.f32 0.03125, %v1734_v59 }
 0x7d4   : > { %v1736_v61 = vadd.f32 1e-05, %v1735_v60 }
 0x7d6   : > { %2375 = vrsqrt.f32 %v1736_v61 }
 0x7e0   : > { %v2376_v62 = vpop.eup %2375 }
 0x7e1   : > { %v1738_v1 = vmul.f32 %v2376_v62, %v1730_v49 }
 0x7e3   : > { %v1745_v3 = vmul.f32 %v2118_v63, %v1738_v1 }
 0x7e5   : > { %v1752_v4 = vadd.f32 %v2119_v2, %v1745_v3 }
 0x7e7   : > { %v1753_v5 = vpack.c.bf16 %v1752_v4, %v1752_v4 }
 0x7e9   : > { %2245 = vmatmul.mubr.msk.bf16.vlgmr.msra.gmra.mrb[24].mxu0 %vm467_vm0, %v1753_v5 }
 0x8bc   : > { %v1814_v10 = vpop.f32.mrb[24].mxu0 }
 0x8bd   : > { %v1815_v11 = vadd.f32 %v2120_v9, %v1814_v10  ;;  %v2246_v12 = vpop.f32.mrb[25].mxu0 }
 0x8be   : > { %v1817_v13 = vpop.f32.mrb[26].mxu0 }
 0x8bf   : > { %v1820_v14 = vmax.f32 %v1815_v11, 0.0  ;;  %v2247_v15 = vpop.f32.mrb[27].mxu0 }
 0x8c1   : > { %v1821_v16 = vpack.c.bf16 %v1820_v14, %v1820_v14 }
 0x8c3   : > { %2265 = vmatmul.mubr.bf16.vlgmr.msra.gmra.mrb[16].mxu1 %v1821_v16 }
 0x996   : > { %v1927_v17 = vpop.f32.mrb[16].mxu1 }
 0x997   : > { %v1928_v18 = vadd.f32 %v2124_v8, %v1927_v17  ;;  %v2266_v19 = vpop.f32.mrb[17].mxu1 }
 0x998   : > { %v1930_v20 = vpop.f32.mrb[18].mxu1 }
 0x999   : > { %v1933_v21 = vadd.f32 %v1928_v18, %v2728_v42  ;;  %v2267_v23 = vpop.f32.mrb[19].mxu1 }
 0x99b   : > { %1934 = vst.msk [vmem:[%s447_s0] sm:$0xff] %vm467_vm0, %v1933_v21 }
 0x99c   : > { %2390 = shalt.err (!%p2387_p5)
}
 0x99d   : > { %s2391_s17 = scalar_lea.hbm %s2791_s1, 128  ;;  %s2395_s14 = scalar_lea.hbm %s2851_s12, 256 }
 0x99e   : > { %p2392_p6 = scmp.ne.s32.totalorder %s2791_s1, %s2391_s17  ;;  %p2396_p10 = scmp.lt.u32.totalorder %s2791_s1, %s2851_s12 }
 0x99f   : > { %p2397_p11 = scmp.lt.u32.totalorder %s2395_s14, %s2391_s17  ;;  %p2399_p13 = scmp.lt.u32.totalorder %s2391_s17, %s2791_s1 }
 0x9a0   : > { %p2393_p7 = pnand %p2392_p6, %p2581_p4 }
 0x9a1   : > { %p2398_p12 = por %p2397_p11, %p2396_p10 }
 0x9a2   : > { %p2394_p9 = pneg %p2393_p7 }
 0x9a3   : > { %p2400_p0 = por %p2399_p13, %p2398_p12 }
 0x9a5   : > { %p2401_p1 = pnand %p2400_p0, %p2394_p9 }
 0x9a7   : > { %2404 = shalt.err (!%p2401_p1)
}
 0x9a8   : > { %2268 = dma.vmem_to_hbm [thread:$0]  (%p2581_p4), %s2793_s30, 128, %s2791_s1, %s1936_s24  }
 0x9a9 PF: > { %p2274_p2 = scmp.ge.s32.totalorder %s2455_s26, 2  ;;  %s1962_s2 = sand.u32 1, %s2435_s21  }
 0x9aa   : > { %s1963_s19 = scalar_lea.sflag [#allocation10], %s1962_s2 }
 0x9ab   : > { %p2271_p3 = pnand %p2274_p2, %p2588_p8 }
 0x9ad   : > { %2430 = dma.done.wait (!%p2271_p3), %s1963_s19, 128  }
 0x9ae   : > { %2432 = vsyncadd (!%p2271_p3), %s1963_s19, 4294967168  ;;  %s25_s26 = sadd.s32 1, %s2455_s26   ;;  %s2860_s21 = smov %s2439_s22 }
 0x9af   : > { %p22_p5 = scmp.ge.s32.totalorder %s25_s26, 4   ;;  %s2861_s22 = smov %s2443_s23 }
 0x9b0   : > { %s2862_s23 = smov %s2594_s16  ;;  %s2863_s24 = smov %s2451_s25 }
 0x9b1   : > { %s2864_s25 = smov %s2866_s29  ;;  %24 = sbr.rel (!%p22_p5) target bundleno = 8 (0x8), region = 139 }
 0x9b8   :  { %1968 = vsyncpa [#allocation10], 1 }
 0x9b9   :  { %1970 = vsyncpa [#allocation10 + $0x1], 1 }

</bundles_post_ra>
